<compile_context>
chip_gen: v6e
topology: v6e:2x2x1
jax: 0.10.0
libtpu: 0.0.40
codegen_flags: <defaults>
</compile_context>

<pallas_src>
import jax
import jax.numpy as jnp
from jax.experimental import pallas as pl
from jax.experimental.pallas import tpu as pltpu

_LANE = 128
_MIB = 1024 * 1024


def _round_up(x: int, m: int) -> int:
    return ((x + m - 1) // m) * m


def _nbytes(shape, itemsize):
    n = 1
    for s in shape:
        n *= int(s)
    return n * int(itemsize)


# --------------------------------------------------------------------------- #
# Kernel
# --------------------------------------------------------------------------- #
def _make_sage_kernel(meta):
    n_layers = meta["n_layers"]
    tile_m = meta["tile_m"]
    dims = meta["dims"]
    n_h_scratch = meta["n_h_scratch"]

    def kernel(*refs):
        h0_ref = refs[0]
        layer_refs = [refs[1 + 4 * l: 1 + 4 * (l + 1)] for l in range(n_layers)]
        o_ref = refs[1 + 4 * n_layers]
        x_scr = refs[2 + 4 * n_layers]
        h_scr = list(refs[3 + 4 * n_layers: 3 + 4 * n_layers + n_h_scratch])

        i = pl.program_id(0)
        row_off = pl.multiple_of(i * tile_m, tile_m)

        # ---------------- layer 0: dst-row tiled (streamed adjacency) --------
        a_ref, w_ref, b_ref, invd_ref = layer_refs[0]
        d0 = dims[0]
        fin0, fout0 = d0["fin_pad"], d0["fout_pad"]

        a_t = a_ref[...].astype(jnp.bfloat16)                      # int8 -> bf16
        agg = jnp.dot(a_t, h0_ref[...], preferred_element_type=jnp.float32)
        agg = agg * invd_ref[...]                                  # mean (f32)

        # fused projection operand [h_dst | mean_agg] written into reused scratch
        x_scr[:tile_m, :fin0] = h0_ref[pl.ds(row_off, tile_m), :]  # already bf16
        x_scr[:tile_m, fin0:2 * fin0] = agg.astype(jnp.bfloat16)
        out0 = jnp.dot(x_scr[:tile_m, :2 * fin0], w_ref[...],
                       preferred_element_type=jnp.float32) + b_ref[...]

        if n_layers == 1:
            o_ref[pl.ds(row_off, tile_m), :] = out0
            return

        out0 = jnp.maximum(out0, 0.0)                 # inter-layer ReLU (dropout=id)
        h_scr[0][pl.ds(row_off, tile_m), :fout0] = out0.astype(jnp.bfloat16)

        # --------------- remaining (smaller) layers: last grid step only -----
        @pl.when(i == pl.num_programs(0) - 1)
        def _tail():
            prev_scr = h_scr[0]
            for l in range(1, n_layers):
                a_l_ref, w_l_ref, b_l_ref, invd_l_ref = layer_refs[l]
                d = dims[l]
                fin_l, fout_l = d["fin_pad"], d["fout_pad"]
                rows = d["dst_pad"]
                src_rows = d["src_pad"]

                a_l = a_l_ref[...].astype(jnp.bfloat16)
                agg_l = jnp.dot(a_l, prev_scr[:src_rows, :fin_l],
                                preferred_element_type=jnp.float32)
                agg_l = agg_l * invd_l_ref[...]

                x_scr[:rows, :fin_l] = prev_scr[:rows, :fin_l]
                x_scr[:rows, fin_l:2 * fin_l] = agg_l.astype(jnp.bfloat16)
                out_l = jnp.dot(x_scr[:rows, :2 * fin_l], w_l_ref[...],
                                preferred_element_type=jnp.float32) + b_l_ref[...]

                if l == n_layers - 1:
                    o_ref[...] = out_l
                else:
                    out_l = jnp.maximum(out_l, 0.0)
                    nxt = h_scr[l % 2]
                    nxt[:rows, :fout_l] = out_l.astype(jnp.bfloat16)
                    prev_scr = nxt

    return kernel


# --------------------------------------------------------------------------- #
# One-time prepare: pad / cast / precompute inv_deg (hoisted off the hot path)
# --------------------------------------------------------------------------- #
def sage_p3_prepare(blocks, feat, params, *, tile_rows=256):
    n_layers = len(params)
    assert len(blocks) == n_layers and n_layers >= 1

    feat = jnp.asarray(feat, jnp.float32)
    n_src0, f_feat = feat.shape

    dims = []
    for l, (adj, (w_s, w_n, b)) in enumerate(zip(blocks, params)):
        n_dst, n_src = adj.shape
        f_in, f_out = w_s.shape
        if l == 0:
            assert n_src == n_src0 and f_in == f_feat
        else:
            # dst nodes of block l-1 must cover the src nodes of block l
            assert n_src <= dims[l - 1]["n_dst"], "next-layer src exceeds previous dst"
            assert f_in == dims[l - 1]["f_out"]
        assert n_dst <= n_src
        dims.append(dict(n_dst=n_dst, n_src=n_src, f_in=f_in, f_out=f_out,
                         fin_pad=_round_up(f_in, _LANE),
                         fout_pad=_round_up(f_out, _LANE)))

    # node-count padding (lane dense for int8 adjacency; layer 0 padded to the tile)
    dst_pad0 = _round_up(dims[0]["n_dst"], _LANE)
    if dst_pad0 >= tile_rows:
        tile_m = tile_rows                              # keep MXU M >= 256 (v5e)
        dst_pad0 = _round_up(dst_pad0, tile_m)
    else:
        tile_m = dst_pad0
    dims[0]["dst_pad"] = dst_pad0
    dims[0]["src_pad"] = _round_up(max(dims[0]["n_src"], dst_pad0), _LANE)
    for l in range(1, n_layers):
        dims[l]["dst_pad"] = _round_up(dims[l]["n_dst"], _LANE)
        dims[l]["src_pad"] = dims[l - 1]["dst_pad"]

    # h0: leading ReLU before the bf16 cast (they commute); dropout == identity (eval)
    h0 = jnp.maximum(feat, 0.0)
    h0_p = jnp.zeros((dims[0]["src_pad"], dims[0]["fin_pad"]), jnp.bfloat16)
    h0_p = h0_p.at[:n_src0, :f_feat].set(h0.astype(jnp.bfloat16))

    call_args = [h0_p]
    for l, (adj, (w_s, w_n, b)) in enumerate(zip(blocks, params)):
        d = dims[l]
        adj = jnp.asarray(adj)

        a_p = jnp.zeros((d["dst_pad"], d["src_pad"]), jnp.int8)      # 0/1 exact
        a_p = a_p.at[:d["n_dst"], :d["n_src"]].set(adj.astype(jnp.int8))

        deg = jnp.sum(adj.astype(jnp.float32), axis=1)
        invd = (1.0 / jnp.maximum(deg, 1.0)).reshape(-1, 1)          # exact divide
        invd_p = jnp.zeros((d["dst_pad"], 1), jnp.float32)
        invd_p = invd_p.at[:d["n_dst"], :].set(invd)

        # stacked projection weights [W_self ; W_neigh] along K, bf16
        w_p = jnp.zeros((2 * d["fin_pad"], d["fout_pad"]), jnp.bfloat16)
        w_p = w_p.at[:d["f_in"], :d["f_out"]].set(
            jnp.asarray(w_s, jnp.float32).astype(jnp.bfloat16))
        w_p = w_p.at[d["fin_pad"]:d["fin_pad"] + d["f_in"], :d["f_out"]].set(
            jnp.asarray(w_n, jnp.float32).astype(jnp.bfloat16))

        b_p = jnp.zeros((1, d["fout_pad"]), jnp.float32)
        b_p = b_p.at[0, :d["f_out"]].set(jnp.asarray(b, jnp.float32))

        call_args += [a_p, w_p, b_p, invd_p]

    # scratch geometry
    x_rows, x_cols = tile_m, 2 * dims[0]["fin_pad"]
    for l in range(1, n_layers):
        x_rows = max(x_rows, dims[l]["dst_pad"])
        x_cols = max(x_cols, 2 * dims[l]["fin_pad"])

    h_scratch = []
    for parity in (0, 1):
        lays = [l for l in range(n_layers - 1) if l % 2 == parity]
        if lays:
            h_scratch.append((max(dims[l]["dst_pad"] for l in lays),
                              max(dims[l]["fout_pad"] for l in lays)))

    meta = dict(n_layers=n_layers, tile_m=tile_m, dims=dims,
                num_tiles=dims[0]["dst_pad"] // tile_m,
                n_h_scratch=len(h_scratch),
                x_scratch=(x_rows, x_cols),
                h_scratch=h_scratch)
    return call_args, meta


# --------------------------------------------------------------------------- #
# Hot path: single fused pallas_call
# --------------------------------------------------------------------------- #
def sage_p3_run(call_args, meta):
    n_layers = meta["n_layers"]
    dims = meta["dims"]
    tile_m = meta["tile_m"]
    num_tiles = meta["num_tiles"]
    d0, dlast = dims[0], dims[-1]

    in_specs = [pl.BlockSpec((d0["src_pad"], d0["fin_pad"]), lambda i: (0, 0))]
    for l in range(n_layers):
        d = dims[l]
        if l == 0:
            a_spec = pl.BlockSpec((tile_m, d["src_pad"]), lambda i: (i, 0))
            invd_spec = pl.BlockSpec((tile_m, 1), lambda i: (i, 0))
        else:
            a_spec = pl.BlockSpec((d["dst_pad"], d["src_pad"]), lambda i: (0, 0))
            invd_spec = pl.BlockSpec((d["dst_pad"], 1), lambda i: (0, 0))
        in_specs += [
            a_spec,
            pl.BlockSpec((2 * d["fin_pad"], d["fout_pad"]), lambda i: (0, 0)),
            pl.BlockSpec((1, d["fout_pad"]), lambda i: (0, 0)),
            invd_spec,
        ]
    out_spec = pl.BlockSpec((dlast["dst_pad"], dlast["fout_pad"]), lambda i: (0, 0))

    scratch_shapes = [pltpu.VMEM(meta["x_scratch"], jnp.bfloat16)]
    scratch_shapes += [pltpu.VMEM(s, jnp.bfloat16) for s in meta["h_scratch"]]

    # ---- VMEM budget: double-buffered input blocks + output + scratch -------
    vmem_needed = 2 * _nbytes((d0["src_pad"], d0["fin_pad"]), 2)
    for l in range(n_layers):
        d = dims[l]
        rows = tile_m if l == 0 else d["dst_pad"]
        vmem_needed += 2 * _nbytes((rows, d["src_pad"]), 1)            # int8 A
        vmem_needed += 2 * _nbytes((2 * d["fin_pad"], d["fout_pad"]), 2)
        vmem_needed += 2 * _nbytes((1, d["fout_pad"]), 4)
        vmem_needed += 2 * _nbytes((rows, 1), 4)
    vmem_needed += 2 * _nbytes((dlast["dst_pad"], dlast["fout_pad"]), 4)
    vmem_needed += _nbytes(meta["x_scratch"], 2)
    for s in meta["h_scratch"]:
        vmem_needed += _nbytes(s, 2)
    vmem_needed += 4 * _MIB                                            # temporaries
    try:
        phys = int(pltpu.get_tpu_info().vmem_capacity_bytes)
    except Exception:
        phys = 64 * _MIB
    vmem_limit = int(min(max(vmem_needed, 32 * _MIB), phys - 8 * _MIB))

    # ---- advisory cost estimate ---------------------------------------------
    flops = 0
    for l in range(n_layers):
        d = dims[l]
        flops += 2 * d["dst_pad"] * d["src_pad"] * d["fin_pad"]
        flops += 2 * d["dst_pad"] * (2 * d["fin_pad"]) * d["fout_pad"]
    bytes_accessed = sum(int(a.size) * int(a.dtype.itemsize) for a in call_args)
    bytes_accessed += int(dlast["dst_pad"] * dlast["fout_pad"] * 4)
    cost = pl.CostEstimate(flops=int(flops), transcendentals=0,
                           bytes_accessed=int(bytes_accessed))

    out_pad = pl.pallas_call(
        _make_sage_kernel(meta),
        out_shape=jax.ShapeDtypeStruct((dlast["dst_pad"], dlast["fout_pad"]),
                                       jnp.float32),
        grid=(num_tiles,),
        in_specs=in_specs,
        out_specs=out_spec,
        scratch_shapes=tuple(scratch_shapes),
        compiler_params=pltpu.CompilerParams(
            dimension_semantics=("arbitrary",),   # cross-iteration scratch dependency
            vmem_limit_bytes=vmem_limit),
        cost_estimate=cost,
    )(*call_args)
    return out_pad[:dlast["n_dst"], :dlast["f_out"]]


def sage_p3_forward(blocks, feat, params):
    call_args, meta = sage_p3_prepare(blocks, feat, params)
    return sage_p3_run(call_args, meta)


# ---------------- pure-JAX reference (f32) for a tolerance check ----------------
def _reference(blocks, feat, params):
    h = jnp.maximum(feat, 0.0)
    n = len(params)
    for l, (a, (ws, wn, b)) in enumerate(zip(blocks, params)):
        deg = jnp.maximum(jnp.sum(a, axis=-1, keepdims=True), 1.0)
        h_neigh = (a @ h) / deg
        h = h[:a.shape[0]] @ ws + h_neigh @ wn + b
        if l != n - 1:
            h = jnp.maximum(h, 0.0)
    return h


def _xavier_uniform(key, shape):
    fan_in, fan_out = shape
    limit = jnp.sqrt(6.0 / (fan_in + fan_out))
    return jax.random.uniform(key, shape, jnp.float32, -limit, limit)


def make_params(key, in_feats, hid_feats, num_layers, out_feats):
    """Same layer stack as SageP3.__init__ (layer_idx 0 is skipped)."""
    dims = []
    for layer_idx in range(num_layers):
        if layer_idx == 0:
            continue
        elif 1 <= layer_idx < num_layers - 1:
            dims.append((hid_feats, hid_feats))
        else:
            dims.append((hid_feats, out_feats))
    params = []
    for (fi, fo) in dims:
        key, k1, k2 = jax.random.split(key, 3)
        params.append((_xavier_uniform(k1, (fi, fo)),
                       _xavier_uniform(k2, (fi, fo)),
                       jnp.zeros((fo,), jnp.float32)))
    return params


if __name__ == "__main__":
    key = jax.random.PRNGKey(0)

    # num_layers=3 -> 2 actual SAGEConv layers (hid->hid, hid->out)
    in_feats, hid_feats, num_layers, out_feats = 32, 32, 3, 16

    # Graph blocks (dense adjacency, dst nodes are the first rows of src):
    #   block 0: 16 src -> 8 dst ; block 1: 8 src -> 4 dst
    key, kf, ka0, ka1, kp = jax.random.split(key, 5)
    feat = jax.random.normal(kf, (16, hid_feats), jnp.float32)
    adj0 = jax.random.bernoulli(ka0, 0.4, (8, 16)).astype(jnp.float32)
    adj1 = jax.random.bernoulli(ka1, 0.4, (4, 8)).astype(jnp.float32)
    blocks = [adj0, adj1]

    params = make_params(kp, in_feats, hid_feats, num_layers, out_feats)

    # one-time prepare (padding / casting / inv_deg), then the fused kernel
    call_args, meta = sage_p3_prepare(blocks, feat, params)
    out = jax.block_until_ready(sage_p3_run(call_args, meta))

    assert out.shape == (4, out_feats), out.shape
    assert bool(jnp.all(jnp.isfinite(out)))

    ref = _reference(blocks, feat, params)
    assert bool(jnp.allclose(out, ref, rtol=5e-2, atol=8e-2)), (
        "max abs err = %f" % float(jnp.max(jnp.abs(out - ref))))
    print("KERNEL_OK")
</pallas_src>

<mosaic_0001>
module attributes {stable_mosaic.version = 11 : i64} {
  func.func @kernel(%arg0: i32, %arg1: memref<128x128xbf16, #tpu.memory_space<vmem>>, %arg2: memref<128x128xi8, #tpu.memory_space<vmem>>, %arg3: memref<256x128xbf16, #tpu.memory_space<vmem>>, %arg4: memref<1x128xf32, #tpu.memory_space<vmem>>, %arg5: memref<128x1xf32, #tpu.memory_space<vmem>>, %arg6: memref<128x128xi8, #tpu.memory_space<vmem>>, %arg7: memref<256x128xbf16, #tpu.memory_space<vmem>>, %arg8: memref<1x128xf32, #tpu.memory_space<vmem>>, %arg9: memref<128x1xf32, #tpu.memory_space<vmem>>, %arg10: memref<128x128xf32, #tpu.memory_space<vmem>>, %arg11: memref<128x256xbf16, #tpu.memory_space<vmem>>, %arg12: memref<128x128xbf16, #tpu.memory_space<vmem>>) attributes {dimension_semantics = [#tpu.dimension_semantics<arbitrary>], iteration_bounds = array<i64: 1>, scalar_prefetch = 0 : i64, scratch_operands = 2 : i64, tpu.core_type = #tpu.core_type<tc>, window_params = [{pipeline_mode = #tpu.pipeline_mode<synchronous>, transform_indices = @transform_0, window_bounds = array<i64: 128, 128>}, {transform_indices = @transform_1, window_bounds = array<i64: 128, 128>}, {pipeline_mode = #tpu.pipeline_mode<synchronous>, transform_indices = @transform_2, window_bounds = array<i64: 256, 128>}, {pipeline_mode = #tpu.pipeline_mode<synchronous>, transform_indices = @transform_3, window_bounds = array<i64: 1, 128>}, {transform_indices = @transform_4, window_bounds = array<i64: 128, 1>}, {pipeline_mode = #tpu.pipeline_mode<synchronous>, transform_indices = @transform_5, window_bounds = array<i64: 128, 128>}, {pipeline_mode = #tpu.pipeline_mode<synchronous>, transform_indices = @transform_6, window_bounds = array<i64: 256, 128>}, {pipeline_mode = #tpu.pipeline_mode<synchronous>, transform_indices = @transform_7, window_bounds = array<i64: 1, 128>}, {pipeline_mode = #tpu.pipeline_mode<synchronous>, transform_indices = @transform_8, window_bounds = array<i64: 128, 1>}, {pipeline_mode = #tpu.pipeline_mode<synchronous>, transform_indices = @transform_9, window_bounds = array<i64: 128, 128>}]} {
    %c128_i32 = arith.constant 128 : i32
    %0 = arith.muli %arg0, %c128_i32 : i32
    %1 = tpu.assume_multiple %0, 128 : i32
    %c0 = arith.constant 0 : index
    %c0_0 = arith.constant 0 : index
    %2 = vector.load %arg2[%c0, %c0_0] : memref<128x128xi8, #tpu.memory_space<vmem>>, vector<128x128xi8>
    %3 = arith.sitofp %2 : vector<128x128xi8> to vector<128x128xbf16>
    %c0_1 = arith.constant 0 : index
    %c0_2 = arith.constant 0 : index
    %4 = vector.load %arg1[%c0_1, %c0_2] : memref<128x128xbf16, #tpu.memory_space<vmem>>, vector<128x128xbf16>
    %cst = arith.constant dense<0.000000e+00> : vector<128x128xf32>
    %5 = tpu.matmul %3, %4, %cst {dimension_numbers = #tpu.dot_dimension_numbers<[1], [0], [0], [1], [0, 0, 1, 1], [], []>} : vector<128x128xbf16>, vector<128x128xbf16>, vector<128x128xf32> -> vector<128x128xf32>
    %c0_3 = arith.constant 0 : index
    %c0_4 = arith.constant 0 : index
    %6 = vector.load %arg5[%c0_3, %c0_4] : memref<128x1xf32, #tpu.memory_space<vmem>>, vector<128x1xf32>
    %7 = vector.broadcast %6 : vector<128x1xf32> to vector<128x128xf32>
    %8 = arith.mulf %5, %7 : vector<128x128xf32>
    %9 = arith.index_cast %1 : i32 to index
    %c0_5 = arith.constant 0 : index
    %10 = vector.load %arg1[%9, %c0_5] : memref<128x128xbf16, #tpu.memory_space<vmem>>, vector<128x128xbf16>
    %c0_6 = arith.constant 0 : index
    %c0_7 = arith.constant 0 : index
    %11 = vector.load %arg11[%c0_6, %c0_7] : memref<128x256xbf16, #tpu.memory_space<vmem>>, vector<128x128xbf16>
    tpu.vector_store %arg11[%c0_6, %c0_7], %10 {strides = array<i32>} : memref<128x256xbf16, #tpu.memory_space<vmem>>, vector<128x128xbf16>,
    %12 = arith.truncf %8 : vector<128x128xf32> to vector<128x128xbf16>
    %c0_8 = arith.constant 0 : index
    %c128 = arith.constant 128 : index
    %13 = vector.load %arg11[%c0_8, %c128] : memref<128x256xbf16, #tpu.memory_space<vmem>>, vector<128x128xbf16>
    tpu.vector_store %arg11[%c0_8, %c128], %12 {strides = array<i32>} : memref<128x256xbf16, #tpu.memory_space<vmem>>, vector<128x128xbf16>,
    %c0_9 = arith.constant 0 : index
    %c0_10 = arith.constant 0 : index
    %14 = vector.load %arg11[%c0_9, %c0_10] : memref<128x256xbf16, #tpu.memory_space<vmem>>, vector<128x256xbf16>
    %c0_11 = arith.constant 0 : index
    %c0_12 = arith.constant 0 : index
    %15 = vector.load %arg3[%c0_11, %c0_12] : memref<256x128xbf16, #tpu.memory_space<vmem>>, vector<256x128xbf16>
    %cst_13 = arith.constant dense<0.000000e+00> : vector<128x128xf32>
    %16 = tpu.matmul %14, %15, %cst_13 {dimension_numbers = #tpu.dot_dimension_numbers<[1], [0], [0], [1], [0, 0, 1, 1], [], []>} : vector<128x256xbf16>, vector<256x128xbf16>, vector<128x128xf32> -> vector<128x128xf32>
    %c0_14 = arith.constant 0 : index
    %c0_15 = arith.constant 0 : index
    %17 = vector.load %arg4[%c0_14, %c0_15] : memref<1x128xf32, #tpu.memory_space<vmem>>, vector<1x128xf32>
    %18 = vector.broadcast %17 : vector<1x128xf32> to vector<128x128xf32>
    %19 = arith.addf %16, %18 : vector<128x128xf32>
    %cst_16 = arith.constant 0.000000e+00 : f32
    %20 = vector.broadcast %cst_16 : f32 to vector<128x128xf32>
    %21 = arith.maximumf %19, %20 : vector<128x128xf32>
    %22 = arith.truncf %21 : vector<128x128xf32> to vector<128x128xbf16>
    %23 = arith.index_cast %1 : i32 to index
    %c0_17 = arith.constant 0 : index
    %24 = vector.load %arg12[%23, %c0_17] : memref<128x128xbf16, #tpu.memory_space<vmem>>, vector<128x128xbf16>
    tpu.vector_store %arg12[%23, %c0_17], %22 {strides = array<i32>} : memref<128x128xbf16, #tpu.memory_space<vmem>>, vector<128x128xbf16>,
    %c0_i32 = arith.constant 0 : i32
    %25 = arith.cmpi eq, %arg0, %c0_i32 : i32
    %26 = arith.extui %25 : i1 to i32
    %c0_i32_18 = arith.constant 0 : i32
    %27 = arith.cmpi ne, %26, %c0_i32_18 : i32
    scf.if %27 {
      %c0_19 = arith.constant 0 : index
      %c0_20 = arith.constant 0 : index
      %28 = vector.load %arg6[%c0_19, %c0_20] : memref<128x128xi8, #tpu.memory_space<vmem>>, vector<128x128xi8>
      %29 = arith.sitofp %28 : vector<128x128xi8> to vector<128x128xbf16>
      %c0_21 = arith.constant 0 : index
      %c0_22 = arith.constant 0 : index
      %30 = vector.load %arg12[%c0_21, %c0_22] : memref<128x128xbf16, #tpu.memory_space<vmem>>, vector<128x128xbf16>
      %cst_23 = arith.constant dense<0.000000e+00> : vector<128x128xf32>
      %31 = tpu.matmul %29, %30, %cst_23 {dimension_numbers = #tpu.dot_dimension_numbers<[1], [0], [0], [1], [0, 0, 1, 1], [], []>} : vector<128x128xbf16>, vector<128x128xbf16>, vector<128x128xf32> -> vector<128x128xf32>
      %c0_24 = arith.constant 0 : index
      %c0_25 = arith.constant 0 : index
      %32 = vector.load %arg9[%c0_24, %c0_25] : memref<128x1xf32, #tpu.memory_space<vmem>>, vector<128x1xf32>
      %33 = vector.broadcast %32 : vector<128x1xf32> to vector<128x128xf32>
      %34 = arith.mulf %31, %33 : vector<128x128xf32>
      %c0_26 = arith.constant 0 : index
      %c0_27 = arith.constant 0 : index
      %35 = vector.load %arg12[%c0_26, %c0_27] : memref<128x128xbf16, #tpu.memory_space<vmem>>, vector<128x128xbf16>
      %c0_28 = arith.constant 0 : index
      %c0_29 = arith.constant 0 : index
      %36 = vector.load %arg11[%c0_28, %c0_29] : memref<128x256xbf16, #tpu.memory_space<vmem>>, vector<128x128xbf16>
      tpu.vector_store %arg11[%c0_28, %c0_29], %35 {strides = array<i32>} : memref<128x256xbf16, #tpu.memory_space<vmem>>, vector<128x128xbf16>,
      %37 = arith.truncf %34 : vector<128x128xf32> to vector<128x128xbf16>
      %c0_30 = arith.constant 0 : index
      %c128_31 = arith.constant 128 : index
      %38 = vector.load %arg11[%c0_30, %c128_31] : memref<128x256xbf16, #tpu.memory_space<vmem>>, vector<128x128xbf16>
      tpu.vector_store %arg11[%c0_30, %c128_31], %37 {strides = array<i32>} : memref<128x256xbf16, #tpu.memory_space<vmem>>, vector<128x128xbf16>,
      %c0_32 = arith.constant 0 : index
      %c0_33 = arith.constant 0 : index
      %39 = vector.load %arg11[%c0_32, %c0_33] : memref<128x256xbf16, #tpu.memory_space<vmem>>, vector<128x256xbf16>
      %c0_34 = arith.constant 0 : index
      %c0_35 = arith.constant 0 : index
      %40 = vector.load %arg7[%c0_34, %c0_35] : memref<256x128xbf16, #tpu.memory_space<vmem>>, vector<256x128xbf16>
      %cst_36 = arith.constant dense<0.000000e+00> : vector<128x128xf32>
      %41 = tpu.matmul %39, %40, %cst_36 {dimension_numbers = #tpu.dot_dimension_numbers<[1], [0], [0], [1], [0, 0, 1, 1], [], []>} : vector<128x256xbf16>, vector<256x128xbf16>, vector<128x128xf32> -> vector<128x128xf32>
      %c0_37 = arith.constant 0 : index
      %c0_38 = arith.constant 0 : index
      %42 = vector.load %arg8[%c0_37, %c0_38] : memref<1x128xf32, #tpu.memory_space<vmem>>, vector<1x128xf32>
      %43 = vector.broadcast %42 : vector<1x128xf32> to vector<128x128xf32>
      %44 = arith.addf %41, %43 : vector<128x128xf32>
      %c0_39 = arith.constant 0 : index
      %c0_40 = arith.constant 0 : index
      %45 = vector.load %arg10[%c0_39, %c0_40] : memref<128x128xf32, #tpu.memory_space<vmem>>, vector<128x128xf32>
      tpu.vector_store %arg10[%c0_39, %c0_40], %44 {strides = array<i32>} : memref<128x128xf32, #tpu.memory_space<vmem>>, vector<128x128xf32>,
    } else {
    }
    return
  }
  func.func @transform_0(%arg0: i32) -> (i32, i32) {
    %c0_i32 = arith.constant 0 : i32
    %c0_i32_0 = arith.constant 0 : i32
    %c0_i32_1 = arith.constant 0 : i32
    return %c0_i32, %c0_i32_0 : i32, i32
  }
  func.func @transform_1(%arg0: i32) -> (i32, i32) {
    %c0_i32 = arith.constant 0 : i32
    %c0_i32_0 = arith.constant 0 : i32
    return %arg0, %c0_i32 : i32, i32
  }
  func.func @transform_2(%arg0: i32) -> (i32, i32) {
    %c0_i32 = arith.constant 0 : i32
    %c0_i32_0 = arith.constant 0 : i32
    %c0_i32_1 = arith.constant 0 : i32
    return %c0_i32, %c0_i32_0 : i32, i32
  }
  func.func @transform_3(%arg0: i32) -> (i32, i32) {
    %c0_i32 = arith.constant 0 : i32
    %c0_i32_0 = arith.constant 0 : i32
    %c0_i32_1 = arith.constant 0 : i32
    return %c0_i32, %c0_i32_0 : i32, i32
  }
  func.func @transform_4(%arg0: i32) -> (i32, i32) {
    %c0_i32 = arith.constant 0 : i32
    %c0_i32_0 = arith.constant 0 : i32
    return %arg0, %c0_i32 : i32, i32
  }
  func.func @transform_5(%arg0: i32) -> (i32, i32) {
    %c0_i32 = arith.constant 0 : i32
    %c0_i32_0 = arith.constant 0 : i32
    %c0_i32_1 = arith.constant 0 : i32
    return %c0_i32, %c0_i32_0 : i32, i32
  }
  func.func @transform_6(%arg0: i32) -> (i32, i32) {
    %c0_i32 = arith.constant 0 : i32
    %c0_i32_0 = arith.constant 0 : i32
    %c0_i32_1 = arith.constant 0 : i32
    return %c0_i32, %c0_i32_0 : i32, i32
  }
  func.func @transform_7(%arg0: i32) -> (i32, i32) {
    %c0_i32 = arith.constant 0 : i32
    %c0_i32_0 = arith.constant 0 : i32
    %c0_i32_1 = arith.constant 0 : i32
    return %c0_i32, %c0_i32_0 : i32, i32
  }
  func.func @transform_8(%arg0: i32) -> (i32, i32) {
    %c0_i32 = arith.constant 0 : i32
    %c0_i32_0 = arith.constant 0 : i32
    %c0_i32_1 = arith.constant 0 : i32
    return %c0_i32, %c0_i32_0 : i32, i32
  }
  func.func @transform_9(%arg0: i32) -> (i32, i32) {
    %c0_i32 = arith.constant 0 : i32
    %c0_i32_0 = arith.constant 0 : i32
    %c0_i32_1 = arith.constant 0 : i32
    return %c0_i32, %c0_i32_0 : i32, i32
  }
}

</mosaic_0001>

<bundles_post_ra>
// kernel: tpu_custom_call.1
= control target key start
LH: loop header
LB: loop body
LE: loop exit
PB: predicated region body
PF: predicated region fallthrough
CT: control target
= control target key end

     0   :  { %14 = vsyncpa [#allocation5], 0  ;;  %s2634_s0 = inlined_call_operand.hbm [shape: bf16[128,128], index: 0, kind: input, shape index: {}]   ;;  %s2635_s1 = inlined_call_operand.hbm [shape: s8[128,128], index: 1, kind: input, shape index: {}]   ;;  %s2636_s2 = inlined_call_operand.vmem [shape: bf16[256,128], index: 2, kind: input, shape index: {}]   ;;  %s2637_s3 = inlined_call_operand.vmem [shape: f32[1,128], index: 3, kind: input, shape index: {}]   ;;  %s2638_s4 = inlined_call_operand.vmem [shape: f32[128,1], index: 4, kind: input, shape index: {}]   ;;  %s2639_s5 = inlined_call_operand.hbm [shape: s8[128,128], index: 5, kind: input, shape index: {}]   ;;  %s2640_s6 = inlined_call_operand.vmem [shape: bf16[256,128], index: 6, kind: input, shape index: {}]   ;;  %s2641_s7 = inlined_call_operand.vmem [shape: f32[1,128], index: 7, kind: input, shape index: {}]   ;;  %s2642_s8 = inlined_call_operand.vmem [shape: f32[128,1], index: 8, kind: input, shape index: {}]   ;;  %s2643_s9 = inlined_call_operand.hbm [shape: f32[128,128], index: 9, kind: output, shape index: {}]  }
   0x1   :  { %15 = vsyncpa [#allocation8], 0 }
   0x2   :  { %16 = vsyncpa [#allocation6], 0  ;;  %s2296_s30 = smov [#allocation7]  }
   0x3   :  { %s34_s10 = sshll.u32 %s2296_s30, 4  ;;  %s35_s10 = int_to_ptr.vmem [resolvable:$true] %s34_s10 }
   0x4   :  { %s2218_s11 = scalar_lea.vmem %s35_s10, 512  ;;  %p2223_p1 = scmp.lt.s32.totalorder %s35_s10, %s35_s10 }
   0x5   :  { %p2219_p0 = scmp.ne.s32.totalorder %s35_s10, %s2218_s11  ;;  %p2224_p2 = scmp.lt.s32.totalorder %s2218_s11, %s2218_s11 }
   0x7   :  { %p2225_p3 = por %p2224_p2, %p2223_p1 }
   0x9   :  { %p2226_p4 = pnand %p2225_p3, %p2219_p0 }
   0xb   :  { %2229 = shalt.err (!%p2226_p4)
}
   0xc   :  { %s2297_s12 = smov 128   ;;  %s2298_s13 = smov 8  }
   0xd   :  { %40 = dma.hbm_to_vmem [thread:$0]  %s2635_s1, 512, %s35_s10, [#allocation8], %s2297_s12, %s2297_s12, %s2298_s13  }
   0xe   :  { %s2299_s16 = smov [#allocation4]  }
   0xf   :  { %s22_s17 = sshll.u32 %s2299_s16, 4  ;;  %s23_s17 = int_to_ptr.vmem [resolvable:$true] %s22_s17 }
  0x10   :  { %s2238_s18 = scalar_lea.vmem %s23_s17, 1024  ;;  %p2243_p6 = scmp.lt.s32.totalorder %s23_s17, %s23_s17 }
  0x11   :  { %p2239_p5 = scmp.ne.s32.totalorder %s23_s17, %s2238_s18  ;;  %p2244_p7 = scmp.lt.s32.totalorder %s2238_s18, %s2238_s18 }
  0x13   :  { %p2245_p8 = por %p2244_p7, %p2243_p6 }
  0x15   :  { %p2246_p9 = pnand %p2245_p8, %p2239_p5 }
  0x17   :  { %2249 = shalt.err (!%p2246_p9)
}
  0x18   :  { %s2300_s19 = smov 64   ;;  %s2301_s20 = smov 4  }
  0x19   :  { %28 = dma.hbm_to_vmem [thread:$0]  %s2634_s0, 1024, %s23_s17, [#allocation5], %s2300_s19, %s2300_s19, %s2301_s20  }
  0x1a   :  { %s2302_s23 = smov [#allocation9]  }
  0x1b   :  { %s52_s24 = sshll.u32 %s2302_s23, 4  ;;  %s53_s24 = int_to_ptr.vmem [resolvable:$true] %s52_s24 }
  0x1c   :  { %s2258_s1 = scalar_lea.vmem %s53_s24, 512  ;;  %p2263_p11 = scmp.lt.s32.totalorder %s53_s24, %s53_s24 }
  0x1d   :  { %p2259_p10 = scmp.ne.s32.totalorder %s53_s24, %s2258_s1  ;;  %p2264_p12 = scmp.lt.s32.totalorder %s2258_s1, %s2258_s1 }
  0x1f   :  { %p2265_p13 = por %p2264_p12, %p2263_p11 }
  0x21   :  { %p2266_p0 = pnand %p2265_p13, %p2259_p10 }
  0x23   :  { %2269 = shalt.err (!%p2266_p0)
}
  0x24   :  { %58 = dma.hbm_to_vmem [thread:$0]  %s2639_s5, 512, %s53_s24, [#allocation8], %s2297_s12, %s2297_s12, %s2298_s13  }
  0x25   :  { %2290 = dma.done.wait [#allocation5], 1024  }
  0x26   :  { %2291 = vsyncadd [#allocation5], 4294966272 }
  0x27   :  { %2292 = dma.done.wait [#allocation8], 1024  }
  0x28   :  { %2293 = vsyncadd [#allocation8], 4294966272  ;;  %v2303_v0 = vmov 0   ;;  %v2114_v1 = vld [vmem:[#allocation4 + $0x38] sm:$0xff]   ;;  %v2115_v2 = vld [vmem:[#allocation4 + $0x30] sm:$0xff]  }
  0x29   :  { %2112 = vset.pattern.permute.xlu0 %v2303_v0  ;;  %2113 = vset.pattern.permute.xlu1 %v2303_v0  ;;  %v2116_v3 = vld [vmem:[#allocation4 + $0x28] sm:$0xff]   ;;  %v2117_v4 = vld [vmem:[#allocation4 + $0x20] sm:$0xff]   ;;  %v251_v8 = vld [vmem:[%s2638_s4 + $0x10] sm:$0xff] }
  0x2a   :  { %2039 = vmatprep.subr.bf16.mxu1 %v2114_v1  ;;  %v76_v5 = vld [vmem:[#allocation7] sm:$0xff]  ;;  %v250_v9 = vld [vmem:[%s2638_s4 + $0x8] sm:$0xff]  ;;  %277 = vperm.xlu1 %2113, %v251_v8   ;;  %v252_v10 = vld [vmem:[%s2638_s4 + $0x18] sm:$0xff] }
  0x2b   :  { %2040 = vmatpush3.bf16.msra.mxu1 %v2114_v1  ;;  %v249_v6 = vld [vmem:[%s2638_s4] sm:$0xff]  ;;  %v80_v7 = vunpack.c.l.s8.bf16 %v76_v5  ;;  %v2118_v11 = vld [vmem:[#allocation4 + $0x18] sm:$0xff]   ;;  %v254_v13 = vld [vmem:[%s2638_s4 + $0x28] sm:$0xff]  ;;  %v81_v26 = vunpack.c.h.s8.bf16 %v76_v5 }
  0x2c   :  { %2041 = vmatprep.subr.bf16.mxu1 %v2115_v2  ;;  %267 = vperm.xlu0 %2112, %v249_v6   ;;  %v253_v12 = vld [vmem:[%s2638_s4 + $0x20] sm:$0xff]  ;;  %v2119_v14 = vld [vmem:[#allocation4 + $0x10] sm:$0xff]   ;;  %v2120_v16 = vld [vmem:[#allocation4 + $0x8] sm:$0xff]  }
  0x2d   :  { %2055 = vmatprep.mubr.bf16.mxu1 %v80_v7  ;;  %v255_v15 = vld [vmem:[%s2638_s4 + $0x30] sm:$0xff]  ;;  %v256_v17 = vld [vmem:[%s2638_s4 + $0x38] sm:$0xff]  ;;  %v257_v18 = vld [vmem:[%s2638_s4 + $0x40] sm:$0xff] }
  0x2e   :  { %282 = vperm.xlu1 %2113, %v252_v10   ;;  %v258_v19 = vld [vmem:[%s2638_s4 + $0x48] sm:$0xff]  ;;  %v2121_v20 = vld [vmem:[#allocation4] sm:$0xff]   ;;  %v259_v21 = vld [vmem:[%s2638_s4 + $0x50] sm:$0xff] }
  0x2f   :  { %2042 = vmatpush3.bf16.msra.mxu1 %v2115_v2  ;;  %v260_v22 = vld [vmem:[%s2638_s4 + $0x58] sm:$0xff]  ;;  %v77_v23 = vld [vmem:[#allocation7 + $0x8] sm:$0xff]  ;;  %v261_v24 = vld [vmem:[%s2638_s4 + $0x60] sm:$0xff] }
  0x30   :  { %2043 = vmatprep.subr.bf16.mxu1 %v2116_v3  ;;  %272 = vperm.xlu0 %2112, %v250_v9   ;;  %v262_v25 = vld [vmem:[%s2638_s4 + $0x68] sm:$0xff]  ;;  %v82_v27 = vunpack.c.l.s8.bf16 %v77_v23  ;;  %v263_v28 = vld [vmem:[%s2638_s4 + $0x70] sm:$0xff]  ;;  %v264_v29 = vld [vmem:[%s2638_s4 + $0x78] sm:$0xff]  ;;  %v83_v33 = vunpack.c.h.s8.bf16 %v77_v23 }
  0x31   :  { %v78_v30 = vld [vmem:[#allocation7 + $0x10] sm:$0xff]  ;;  %v1080_v31 = vld [vmem:[%s2642_s8] sm:$0xff]  ;;  %v1081_v32 = vld [vmem:[%s2642_s8 + $0x8] sm:$0xff] }
  0x32   :  { %292 = vperm.xlu1 %2113, %v254_v13   ;;  %v84_v34 = vunpack.c.l.s8.bf16 %v78_v30  ;;  %v1082_v35 = vld [vmem:[%s2642_s8 + $0x10] sm:$0xff]  ;;  %v1083_v36 = vld [vmem:[%s2642_s8 + $0x18] sm:$0xff]  ;;  %v85_v38 = vunpack.c.h.s8.bf16 %v78_v30  ;;  %v1084_v39 = vld [vmem:[%s2642_s8 + $0x20] sm:$0xff] }
  0x33   :  { %2044 = vmatpush3.bf16.msra.mxu1 %v2116_v3  ;;  %v79_v37 = vld [vmem:[#allocation7 + $0x18] sm:$0xff]  ;;  %v1085_v41 = vld [vmem:[%s2642_s8 + $0x28] sm:$0xff]  ;;  %v1086_v43 = vld [vmem:[%s2642_s8 + $0x30] sm:$0xff] }
  0x34   :  { %2045 = vmatprep.subr.bf16.mxu1 %v2117_v4  ;;  %287 = vperm.xlu0 %2112, %v253_v12   ;;  %v86_v40 = vunpack.c.l.s8.bf16 %v79_v37  ;;  %v2122_v42 = vld [vmem:[%s2636_s2 + $0x78] sm:$0xff]   ;;  %v2124_v46 = vld [vmem:[%s2636_s2 + $0x70] sm:$0xff]   ;;  %v87_v47 = vunpack.c.h.s8.bf16 %v79_v37  ;;  %v1088_v48 = vld [vmem:[%s2642_s8 + $0x40] sm:$0xff] }
  0x35   :  { %v1087_v44 = vld [vmem:[%s2642_s8 + $0x38] sm:$0xff]  ;;  %v1089_v49 = vld [vmem:[%s2642_s8 + $0x48] sm:$0xff]  ;;  %v2125_v50 = vld [vmem:[%s2636_s2 + $0x30] sm:$0xff]  }
  0x36   :  { %302 = vperm.xlu1 %2113, %v256_v17   ;;  %v2123_v45 = vld [vmem:[%s2636_s2 + $0x38] sm:$0xff]   ;;  %v2126_v51 = vld [vmem:[%s2636_s2 + $0x68] sm:$0xff]   ;;  %v1090_v52 = vld [vmem:[%s2642_s8 + $0x50] sm:$0xff] }
  0x37   :  { %2046 = vmatpush3.bf16.msra.mxu1 %v2117_v4  ;;  %v1091_v53 = vld [vmem:[%s2642_s8 + $0x58] sm:$0xff]  ;;  %v2127_v54 = vld [vmem:[%s2636_s2 + $0x28] sm:$0xff]   ;;  %v1092_v55 = vld [vmem:[%s2642_s8 + $0x60] sm:$0xff] }
  0x38   :  { %2047 = vmatprep.subr.bf16.mxu1 %v2118_v11  ;;  %297 = vperm.xlu0 %2112, %v255_v15   ;;  %v1093_v56 = vld [vmem:[%s2642_s8 + $0x68] sm:$0xff]  ;;  %v1094_v57 = vld [vmem:[%s2642_s8 + $0x70] sm:$0xff]  ;;  %v1095_v58 = vld [vmem:[%s2642_s8 + $0x78] sm:$0xff] }
  0x39   :  { %v2128_v59 = vld [vmem:[%s2636_s2 + $0x60] sm:$0xff]   ;;  %v2130_v61 = vld [vmem:[%s2636_s2 + $0x58] sm:$0xff]   ;;  %v367_v63 = vld [vmem:[#allocation4 + $0x8] sm:$0xf] }
  0x3a   :  { %312 = vperm.xlu1 %2113, %v258_v19   ;;  %v2129_v60 = vld [vmem:[%s2636_s2 + $0x20] sm:$0xff]   ;;  %v2131_v62 = vld [vmem:[%s2636_s2 + $0x18] sm:$0xff]   ;;  %383 = vst [vmem:[#allocation2 + $0x10] sm:$0xf] %v367_v63  ;;  %v2132_v1 = vld [vmem:[%s2636_s2 + $0x50] sm:$0xff]  }
  0x3b   :  { %2048 = vmatpush3.bf16.msra.mxu1 %v2118_v11  ;;  %v365_v0 = vld [vmem:[#allocation4] sm:$0xf]  ;;  %v2133_v2 = vld [vmem:[%s2636_s2 + $0x10] sm:$0xff]   ;;  %v368_v3 = vld [vmem:[#allocation4 + $0xc] sm:$0xf] }
  0x3c   :  { %2049 = vmatprep.subr.bf16.mxu1 %v2119_v14  ;;  %307 = vperm.xlu0 %2112, %v257_v18   ;;  %381 = vst [vmem:[#allocation2] sm:$0xf] %v365_v0  ;;  %384 = vst [vmem:[#allocation2 + $0x18] sm:$0xf] %v368_v3  ;;  %v366_v4 = vld [vmem:[#allocation4 + $0x4] sm:$0xf] }
  0x3d   :  { %v2134_v5 = vld [vmem:[%s2636_s2 + $0x48] sm:$0xff]   ;;  %382 = vst [vmem:[#allocation2 + $0x8] sm:$0xf] %v366_v4  ;;  %v371_v7 = vld [vmem:[#allocation4 + $0x18] sm:$0xf]  ;;  %v2136_v9 = vld [vmem:[%s2636_s2 + $0x40] sm:$0xff]  }
  0x3e   :  { %322 = vperm.xlu1 %2113, %v260_v22   ;;  %v2135_v6 = vld [vmem:[%s2636_s2 + $0x8] sm:$0xff]   ;;  %387 = vst [vmem:[#allocation2 + $0x30] sm:$0xf] %v371_v7  ;;  %v369_v8 = vld [vmem:[#allocation4 + $0x10] sm:$0xf]  ;;  %v2137_v10 = vld [vmem:[%s2636_s2] sm:$0xff]  }
  0x3f   :  { %2050 = vmatpush3.bf16.msra.mxu1 %v2119_v14  ;;  %385 = vst [vmem:[#allocation2 + $0x20] sm:$0xf] %v369_v8  ;;  %v372_v11 = vld [vmem:[#allocation4 + $0x1c] sm:$0xf]  ;;  %v370_v12 = vld [vmem:[#allocation4 + $0x14] sm:$0xf] }
  0x40   :  { %2051 = vmatprep.subr.bf16.mxu1 %v2120_v16  ;;  %317 = vperm.xlu0 %2112, %v259_v21   ;;  %388 = vst [vmem:[#allocation2 + $0x38] sm:$0xf] %v372_v11  ;;  %386 = vst [vmem:[#allocation2 + $0x28] sm:$0xf] %v370_v12  ;;  %v375_v13 = vld [vmem:[#allocation4 + $0x28] sm:$0xf] }
  0x41   :  { %391 = vst [vmem:[#allocation2 + $0x50] sm:$0xf] %v375_v13  ;;  %v373_v14 = vld [vmem:[#allocation4 + $0x20] sm:$0xf]  ;;  %v376_v15 = vld [vmem:[#allocation4 + $0x2c] sm:$0xf] }
  0x42   :  { %332 = vperm.xlu1 %2113, %v262_v25   ;;  %389 = vst [vmem:[#allocation2 + $0x40] sm:$0xf] %v373_v14  ;;  %392 = vst [vmem:[#allocation2 + $0x58] sm:$0xf] %v376_v15  ;;  %v379_v17 = vld [vmem:[#allocation4 + $0x38] sm:$0xf] }
  0x43   :  { %2052 = vmatpush3.bf16.msra.mxu1 %v2120_v16  ;;  %v374_v16 = vld [vmem:[#allocation4 + $0x24] sm:$0xf]  ;;  %395 = vst [vmem:[#allocation2 + $0x70] sm:$0xf] %v379_v17  ;;  %v377_v18 = vld [vmem:[#allocation4 + $0x30] sm:$0xf] }
  0x44   :  { %2053 = vmatprep.subr.bf16.mxu1 %v2121_v20  ;;  %327 = vperm.xlu0 %2112, %v261_v24   ;;  %390 = vst [vmem:[#allocation2 + $0x48] sm:$0xf] %v374_v16  ;;  %393 = vst [vmem:[#allocation2 + $0x60] sm:$0xf] %v377_v18  ;;  %v380_v19 = vld [vmem:[#allocation4 + $0x3c] sm:$0xf] }
  0x45   :  { %396 = vst [vmem:[#allocation2 + $0x78] sm:$0xf] %v380_v19  ;;  %v2143_v16 = vld [vmem:[#allocation2 + $0x10] ss:$8 sps:$4 sm:$0xff]  }
  0x46   :  { %342 = vperm.xlu1 %2113, %v264_v29  }
  0x47   :  { %2054 = vmatpush3.bf16.msra.mxu1 %v2121_v20  ;;  %v378_v20 = vld [vmem:[#allocation4 + $0x34] sm:$0xf] }
  0x48   :  { %337 = vperm.xlu0 %2112, %v263_v28   ;;  %1895 = vmatprep.subr.bf16.mxu1 %v2122_v42  ;;  %394 = vst [vmem:[#allocation2 + $0x68] sm:$0xf] %v378_v20 }
  0x4a   :  { %2056 = vmatmul.mubr.bf16.vlgmr.msra.gmra.mxu1 %v81_v26  ;;  %1103 = vperm.xlu1 %2113, %v1081_v32  }
  0x4b   :  { %2059 = vmatprep.mubr.bf16.mxu1 %v82_v27  ;;  %1896 = vmatpush3.bf16.msra.mxu1 %v2123_v45 }
  0x4c   :  { %1098 = vperm.xlu0 %2112, %v1080_v31   ;;  %1897 = vmatprep.subr.bf16.mxu1 %v2124_v46 }
  0x4e   :  { %1113 = vperm.xlu1 %2113, %v1083_v36  }
  0x4f   :  { %1898 = vmatpush3.bf16.msra.mxu1 %v2125_v50 }
  0x50   :  { %1108 = vperm.xlu0 %2112, %v1082_v35   ;;  %1899 = vmatprep.subr.bf16.mxu1 %v2126_v51 }
  0x52   :  { %2060 = vmatmul.mubr.bf16.gmra.mxu1 %v83_v33  ;;  %1123 = vperm.xlu1 %2113, %v1085_v41  }
  0x53   :  { %2063 = vmatprep.mubr.bf16.mxu1 %v84_v34  ;;  %1900 = vmatpush3.bf16.msra.mxu1 %v2127_v54 }
  0x54   :  { %1118 = vperm.xlu0 %2112, %v1084_v39   ;;  %1901 = vmatprep.subr.bf16.mxu1 %v2128_v59 }
  0x56   :  { %1133 = vperm.xlu1 %2113, %v1087_v44  }
  0x57   :  { %1902 = vmatpush3.bf16.msra.mxu1 %v2129_v60 }
  0x58   :  { %1128 = vperm.xlu0 %2112, %v1086_v43   ;;  %1903 = vmatprep.subr.bf16.mxu1 %v2130_v61 }
  0x5a   :  { %2064 = vmatmul.mubr.bf16.gmra.mxu1 %v85_v38  ;;  %1143 = vperm.xlu1 %2113, %v1089_v49  }
  0x5b   :  { %2067 = vmatprep.mubr.bf16.mxu1 %v86_v40  ;;  %1904 = vmatpush3.bf16.msra.mxu1 %v2131_v62  ;;  %v2140_v62 = vld [vmem:[#allocation2] ss:$8 sps:$4 sm:$0xff]  }
  0x5c   :  { %1138 = vperm.xlu0 %2112, %v1088_v48   ;;  %1905 = vmatprep.subr.bf16.mxu1 %v2132_v1 }
  0x5e   :  { %1153 = vperm.xlu1 %2113, %v1091_v53  }
  0x5f   :  { %1906 = vmatpush3.bf16.msra.mxu1 %v2133_v2 }
  0x60   :  { %1148 = vperm.xlu0 %2112, %v1090_v52   ;;  %1907 = vmatprep.subr.bf16.mxu1 %v2134_v5 }
  0x62   :  { %2068 = vmatmul.mubr.bf16.gmra.mxu1 %v87_v47  ;;  %1163 = vperm.xlu1 %2113, %v1093_v56  }
  0x63   :  { %1908 = vmatpush3.bf16.msra.mxu1 %v2135_v6 }
  0x64   :  { %1158 = vperm.xlu0 %2112, %v1092_v55   ;;  %1909 = vmatprep.subr.bf16.mxu1 %v2136_v9 }
  0x66   :  { %1173 = vperm.xlu1 %2113, %v1095_v58  }
  0x67   :  { %1910 = vmatpush3.bf16.msra.mxu1 %v2137_v10 }
  0x68   :  { %1168 = vperm.xlu0 %2112, %v1094_v57  }
  0xa5   :  { %v278_v22 = vpop.permute.xlu1 %277 }
  0xa7   :  { %v268_v21 = vpop.permute.xlu0 %267 }
  0xa9   :  { %v283_v24 = vpop.permute.xlu1 %282 }
  0xab   :  { %v273_v23 = vpop.permute.xlu0 %272 }
  0xad   :  { %v293_v26 = vpop.permute.xlu1 %292 }
  0xaf   :  { %v288_v25 = vpop.permute.xlu0 %287 }
  0xb1   :  { %v303_v33 = vpop.permute.xlu1 %302 }
  0xb3   :  { %v298_v27 = vpop.permute.xlu0 %297 }
  0xb5   :  { %v313_v44 = vpop.permute.xlu1 %312 }
  0xb7   :  { %v308_v37 = vpop.permute.xlu0 %307 }
  0xb9   :  { %v323_v55 = vpop.permute.xlu1 %322 }
  0xbb   :  { %v318_v48 = vpop.permute.xlu0 %317 }
  0xbd   :  { %v333_v5 = vpop.permute.xlu1 %332 }
  0xbf   :  { %v328_v59 = vpop.permute.xlu0 %327 }
  0xc1   :  { %v343_v17 = vpop.permute.xlu1 %342 }
  0xc3   :  { %v338_v9 = vpop.permute.xlu0 %337 }
 0x10a   :  { %v2057_v28 = vpop.f32.mrf.mxu1 }
 0x10b   :  { %v347_v29 = vmul.f32 %v2057_v28, %v278_v22  ;;  %v2149_v28 = vld [vmem:[#allocation2 + $0x30] ss:$8 sps:$4 sm:$0xff]  }
 0x10c   :  { %v186_v30 = vpop.f32.mrf.mxu1 }
 0x10d   :  { %v1786_v31 = vpack.c.bf16 %v347_v29, %v347_v29  ;;  %v345_v32 = vmul.f32 %v268_v21, %v186_v30  ;;  %v2152_v30 = vld [vmem:[#allocation2 + $0x40] ss:$8 sps:$4 sm:$0xff]  }
 0x10e   :  { %v2058_v34 = vpop.f32.mrf.mxu1 }
 0x10f   :  { %463 = vst [vmem:[#allocation2 + $0x14] sm:$0xf] %v1786_v31  ;;  %v1784_v35 = vpack.c.bf16 %v345_v32, %v345_v32  ;;  %v348_v36 = vmul.f32 %v2058_v34, %v283_v24  ;;  %v2155_v32 = vld [vmem:[#allocation2 + $0x50] ss:$8 sps:$4 sm:$0xff]   ;;  %v2158_v34 = vld [vmem:[#allocation2 + $0x60] ss:$8 sps:$4 sm:$0xff]  }
 0x110   :  { %v189_v38 = vpop.f32.mrf.mxu1 }
 0x111   :  { %461 = vst [vmem:[#allocation2 + $0x4] sm:$0xf] %v1784_v35  ;;  %v1787_v39 = vpack.c.bf16 %v348_v36, %v348_v36  ;;  %v346_v40 = vmul.f32 %v273_v23, %v189_v38  ;;  %v2161_v36 = vld [vmem:[#allocation2 + $0x70] ss:$8 sps:$4 sm:$0xff]  }
 0x112   :  { %v2061_v41 = vpop.f32.mrf.mxu1 }
 0x113   :  { %464 = vst [vmem:[#allocation2 + $0x1c] sm:$0xf] %v1787_v39  ;;  %v1785_v42 = vpack.c.bf16 %v346_v40, %v346_v40  ;;  %v351_v43 = vmul.f32 %v2061_v41, %v298_v27 }
 0x114   :  { %v202_v45 = vpop.f32.mrf.mxu1 }
 0x115   :  { %462 = vst [vmem:[#allocation2 + $0xc] sm:$0xf] %v1785_v42  ;;  %v1790_v46 = vpack.c.bf16 %v351_v43, %v351_v43  ;;  %v349_v47 = vmul.f32 %v288_v25, %v202_v45  ;;  %v2520_v42 = vld [vmem:[%s2637_s3] ss:$0 sm:$0xff] }
 0x116   :  { %v2062_v49 = vpop.f32.mrf.mxu1 }
 0x117   :  { %467 = vst [vmem:[#allocation2 + $0x34] sm:$0xf] %v1790_v46  ;;  %v1788_v50 = vpack.c.bf16 %v349_v47, %v349_v47  ;;  %v352_v51 = vmul.f32 %v2062_v49, %v303_v33 }
 0x118   :  { %v205_v52 = vpop.f32.mrf.mxu1 }
 0x119   :  { %465 = vst [vmem:[#allocation2 + $0x24] sm:$0xf] %v1788_v50  ;;  %v1791_v53 = vpack.c.bf16 %v352_v51, %v352_v51  ;;  %v350_v54 = vmul.f32 %v293_v26, %v205_v52  ;;  %v2146_v26 = vld [vmem:[#allocation2 + $0x20] ss:$8 sps:$4 sm:$0xff]  }
 0x11a   :  { %v2065_v56 = vpop.f32.mrf.mxu1  ;;  %v2141_v2 = vld [vmem:[#allocation2 + $0x14] ss:$8 sps:$4 sm:$0xff]  }
 0x11b   :  { %468 = vst [vmem:[#allocation2 + $0x3c] sm:$0xf] %v1791_v53  ;;  %v1789_v57 = vpack.c.bf16 %v350_v54, %v350_v54  ;;  %v355_v58 = vmul.f32 %v2065_v56, %v318_v48 }
 0x11c   :  { %v218_v60 = vpop.f32.mrf.mxu1  ;;  %v2138_v61 = vld [vmem:[#allocation2 + $0x4] ss:$8 sps:$4 sm:$0xff]  }
 0x11d   :  { %466 = vst [vmem:[#allocation2 + $0x2c] sm:$0xf] %v1789_v57  ;;  %v1794_v63 = vpack.c.bf16 %v355_v58, %v355_v58  ;;  %v353_v0 = vmul.f32 %v308_v37, %v218_v60  ;;  %740 = vmatprep.mubr.bf16.mxu1 %v2138_v61  ;;  %v2514_v37 = vld [vmem:[#allocation9] sm:$0xff] }
 0x11e   :  { %v2066_v1 = vpop.f32.mrf.mxu1  ;;  %741 = vmatmul.mubr.bf16.vlgmr.msra.gmra.mxu1 %v2140_v62  ;;  %v911_v38 = vunpack.c.l.s8.bf16 %v2514_v37 }
 0x11f   :  { %471 = vst [vmem:[#allocation2 + $0x54] sm:$0xf] %v1794_v63  ;;  %v1792_v3 = vpack.c.bf16 %v353_v0, %v353_v0  ;;  %v356_v4 = vmul.f32 %v2066_v1, %v323_v55  ;;  %748 = vmatprep.mubr.bf16.mxu1 %v2141_v2 }
 0x120   :  { %v221_v6 = vpop.f32.mrf.mxu1  ;;  %2087 = vmatprep.mubr.bf16.mxu0 %v911_v38 }
 0x121   :  { %469 = vst [vmem:[#allocation2 + $0x44] sm:$0xf] %v1792_v3  ;;  %v1795_v7 = vpack.c.bf16 %v356_v4, %v356_v4  ;;  %v354_v8 = vmul.f32 %v313_v44, %v221_v6 }
 0x122   :  { %v2069_v10 = vpop.f32.mrf.mxu1  ;;  %v2147_v27 = vld [vmem:[#allocation2 + $0x34] ss:$8 sps:$4 sm:$0xff]  }
 0x123   :  { %472 = vst [vmem:[#allocation2 + $0x5c] sm:$0xf] %v1795_v7  ;;  %v1793_v11 = vpack.c.bf16 %v354_v8, %v354_v8  ;;  %v359_v12 = vmul.f32 %v2069_v10, %v338_v9 }
 0x124   :  { %v234_v13 = vpop.f32.mrf.mxu1  ;;  %v2144_v19 = vld [vmem:[#allocation2 + $0x24] ss:$8 sps:$4 sm:$0xff]  }
 0x125   :  { %470 = vst [vmem:[#allocation2 + $0x4c] sm:$0xf] %v1793_v11  ;;  %v1798_v14 = vpack.c.bf16 %v359_v12, %v359_v12  ;;  %v357_v15 = vmul.f32 %v328_v59, %v234_v13 }
 0x126   :  { %v2070_v18 = vpop.f32.mrf.mxu1  ;;  %749 = vmatmul.mubr.bf16.gmra.mxu1 %v2143_v16 }
 0x127   :  { %475 = vst [vmem:[#allocation2 + $0x74] sm:$0xf] %v1798_v14  ;;  %v1796_v20 = vpack.c.bf16 %v357_v15, %v357_v15  ;;  %v360_v21 = vmul.f32 %v2070_v18, %v343_v17  ;;  %756 = vmatprep.mubr.bf16.mxu1 %v2144_v19 }
 0x128   :  { %v237_v22 = vpop.f32.mrf.mxu1 }
 0x129   :  { %473 = vst [vmem:[#allocation2 + $0x64] sm:$0xf] %v1796_v20  ;;  %v1799_v23 = vpack.c.bf16 %v360_v21, %v360_v21  ;;  %v358_v24 = vmul.f32 %v333_v5, %v237_v22 }
 0x12a   :  { %v2153_v31 = vld [vmem:[#allocation2 + $0x54] ss:$8 sps:$4 sm:$0xff]  }
 0x12b   :  { %476 = vst [vmem:[#allocation2 + $0x7c] sm:$0xf] %v1799_v23  ;;  %v1797_v25 = vpack.c.bf16 %v358_v24, %v358_v24 }
 0x12c   :  { %v2150_v29 = vld [vmem:[#allocation2 + $0x44] ss:$8 sps:$4 sm:$0xff]  }
 0x12d   :  { %474 = vst [vmem:[#allocation2 + $0x6c] sm:$0xf] %v1797_v25 }
 0x12e   :  { %757 = vmatmul.mubr.bf16.gmra.mxu1 %v2146_v26 }
 0x12f   :  { %764 = vmatprep.mubr.bf16.mxu1 %v2147_v27 }
 0x132   :  { %v2159_v35 = vld [vmem:[#allocation2 + $0x74] ss:$8 sps:$4 sm:$0xff]  }
 0x134   :  { %v2156_v33 = vld [vmem:[#allocation2 + $0x64] ss:$8 sps:$4 sm:$0xff]  }
 0x136   :  { %765 = vmatmul.mubr.bf16.gmra.mxu1 %v2149_v28 }
 0x137   :  { %772 = vmatprep.mubr.bf16.mxu1 %v2150_v29 }
 0x13e   :  { %773 = vmatmul.mubr.bf16.gmra.mxu1 %v2152_v30 }
 0x13f   :  { %780 = vmatprep.mubr.bf16.mxu1 %v2153_v31 }
 0x146   :  { %781 = vmatmul.mubr.bf16.gmra.mxu1 %v2155_v32 }
 0x147   :  { %788 = vmatprep.mubr.bf16.mxu1 %v2156_v33 }
 0x14e   :  { %789 = vmatmul.mubr.bf16.gmra.mxu1 %v2158_v34 }
 0x14f   :  { %796 = vmatprep.mubr.bf16.mxu1 %v2159_v35 }
 0x156   :  { %797 = vmatmul.mubr.bf16.gmra.mxu1 %v2161_v36 }
 0x1de   :  { %v1911_v39 = vpop.f32.mrf.mxu1 }
 0x1e0   :  { %v1912_v40 = vpop.f32.mrf.mxu1 }
 0x1e1   :  { %v1913_v41 = vadd.f32 %v1912_v40, %v1911_v39 }
 0x1e2   :  { %v1914_v43 = vpop.f32.mrf.mxu1 }
 0x1e3   :  { %v743_v45 = vadd.f32 %v1913_v41, %v2520_v42 }
 0x1e4   :  { %v1915_v44 = vpop.f32.mrf.mxu1 }
 0x1e5   :  { %v1916_v46 = vadd.f32 %v1915_v44, %v1914_v43  ;;  %v805_v50 = vmax.f32 %v743_v45, 0.0 }
 0x1e6   :  { %v1917_v47 = vpop.f32.mrf.mxu1 }
 0x1e7   :  { %v746_v48 = vadd.f32 %v1916_v46, %v2520_v42 }
 0x1e8   :  { %v1918_v49 = vpop.f32.mrf.mxu1 }
 0x1e9   :  { %v806_v51 = vmax.f32 %v746_v48, 0.0  ;;  %v1919_v52 = vadd.f32 %v1918_v49, %v1917_v47 }
 0x1ea   :  { %v1920_v53 = vpop.f32.mrf.mxu1 }
 0x1eb   :  { %v1835_v54 = vpack.c.bf16 %v806_v51, %v805_v50  ;;  %v751_v56 = vadd.f32 %v1919_v52, %v2520_v42 }
 0x1ec   :  { %v1921_v55 = vpop.f32.mrf.mxu1 }
 0x1ed   :  { %1836 = vst [vmem:[#allocation3] sm:$0xff] %v1835_v54   ;;  %v1922_v57 = vadd.f32 %v1921_v55, %v1920_v53  ;;  %v807_v61 = vmax.f32 %v751_v56, 0.0 }
 0x1ee   :  { %v1923_v58 = vpop.f32.mrf.mxu1 }
 0x1ef   :  { %v754_v59 = vadd.f32 %v1922_v57, %v2520_v42 }
 0x1f0   :  { %v1924_v60 = vpop.f32.mrf.mxu1 }
 0x1f1   :  { %v808_v62 = vmax.f32 %v754_v59, 0.0  ;;  %v1925_v63 = vadd.f32 %v1924_v60, %v1923_v58 }
 0x1f2   :  { %v1926_v0 = vpop.f32.mrf.mxu1 }
 0x1f3   :  { %v1840_v1 = vpack.c.bf16 %v808_v62, %v807_v61  ;;  %v759_v5 = vadd.f32 %v1925_v63, %v2520_v42 }
 0x1f4   :  { %v1927_v2 = vpop.f32.mrf.mxu1  ;;  %v919_v3 = vld [vmem:[#allocation3] sm:$0xf]  ;;  %v920_v4 = vld [vmem:[#allocation3 + $0x4] sm:$0xf] }
 0x1f5   :  { %1872 = vst [vmem:[#allocation3 + $0x8] sm:$0xff] %v1840_v1   ;;  %v1928_v6 = vadd.f32 %v1927_v2, %v1926_v0  ;;  %v2527_v7 = vcombine.low %v919_v3, %v920_v4  ;;  %1192 = vst [vmem:[#allocation2] sm:$0xf] %v919_v3  ;;  %v809_v11 = vmax.f32 %v759_v5, 0.0 }
 0x1f6   :  { %1193 = vst [vmem:[#allocation2 + $0x8] sm:$0xf] %v920_v4  ;;  %v1929_v8 = vpop.f32.mrf.mxu1 }
 0x1f7   :  { %v762_v9 = vadd.f32 %v1928_v6, %v2520_v42 }
 0x1f8   :  { %v1930_v10 = vpop.f32.mrf.mxu1 }
 0x1f9   :  { %v810_v12 = vmax.f32 %v762_v9, 0.0  ;;  %v1931_v13 = vadd.f32 %v1930_v10, %v1929_v8 }
 0x1fa   :  { %v1932_v14 = vpop.f32.mrf.mxu1 }
 0x1fb   :  { %v1845_v15 = vpack.c.bf16 %v810_v12, %v809_v11  ;;  %v767_v19 = vadd.f32 %v1931_v13, %v2520_v42 }
 0x1fc   :  { %v1933_v16 = vpop.f32.mrf.mxu1  ;;  %v921_v17 = vld [vmem:[#allocation3 + $0x8] sm:$0xf]  ;;  %v922_v18 = vld [vmem:[#allocation3 + $0xc] sm:$0xf] }
 0x1fd   :  { %1873 = vst [vmem:[#allocation3 + $0x10] sm:$0xff] %v1845_v15   ;;  %v1934_v20 = vadd.f32 %v1933_v16, %v1932_v14  ;;  %v2531_v21 = vcombine.low %v921_v17, %v922_v18  ;;  %1194 = vst [vmem:[#allocation2 + $0x10] sm:$0xf] %v921_v17  ;;  %v811_v25 = vmax.f32 %v767_v19, 0.0 }
 0x1fe   :  { %1195 = vst [vmem:[#allocation2 + $0x18] sm:$0xf] %v922_v18  ;;  %v1935_v22 = vpop.f32.mrf.mxu1 }
 0x1ff   :  { %v770_v23 = vadd.f32 %v1934_v20, %v2520_v42 }
 0x200   :  { %v1936_v24 = vpop.f32.mrf.mxu1 }
 0x201   :  { %v812_v26 = vmax.f32 %v770_v23, 0.0  ;;  %v1937_v27 = vadd.f32 %v1936_v24, %v1935_v22 }
 0x202   :  { %v1938_v28 = vpop.f32.mrf.mxu1 }
 0x203   :  { %v1850_v29 = vpack.c.bf16 %v812_v26, %v811_v25  ;;  %v775_v33 = vadd.f32 %v1937_v27, %v2520_v42  ;;  %v908_v27 = vld [vmem:[#allocation9 + $0x8] sm:$0xff] }
 0x204   :  { %v1939_v30 = vpop.f32.mrf.mxu1  ;;  %v2534_v31 = vld [vmem:[#allocation3 + $0x10] sm:$0xf]  ;;  %v2536_v32 = vld [vmem:[#allocation3 + $0x14] sm:$0xf] }
 0x205   :  { %1874 = vst [vmem:[#allocation3 + $0x18] sm:$0xff] %v1850_v29   ;;  %v1940_v34 = vadd.f32 %v1939_v30, %v1938_v28  ;;  %1196 = vst [vmem:[#allocation2 + $0x20] sm:$0xf] %v2534_v31  ;;  %v813_v39 = vmax.f32 %v775_v33, 0.0  ;;  %v1729_v26 = vcombine.low %v2534_v31, %v2536_v32  ;;  %v2170_v28 = vld [vmem:[%s2640_s6 + $0x78] sm:$0xff]   ;;  %v912_v29 = vunpack.c.h.s8.bf16 %v2514_v37  ;;  %v909_v37 = vld [vmem:[#allocation9 + $0x10] sm:$0xff] }
 0x206   :  { %1197 = vst [vmem:[#allocation2 + $0x28] sm:$0xf] %v2536_v32  ;;  %v1941_v35 = vpop.f32.mrf.mxu1  ;;  %v913_v30 = vunpack.c.l.s8.bf16 %v908_v27  ;;  %v2171_v31 = vld [vmem:[%s2640_s6 + $0x38] sm:$0xff]   ;;  %v2173_v32 = vld [vmem:[%s2640_s6 + $0x30] sm:$0xff]   ;;  %v914_v33 = vunpack.c.h.s8.bf16 %v908_v27 }
 0x207   :  { %v778_v36 = vadd.f32 %v1940_v34, %v2520_v42  ;;  %v915_v34 = vunpack.c.l.s8.bf16 %v909_v37 }
 0x208   :  { %v1942_v38 = vpop.f32.mrf.mxu1 }
 0x209   :  { %v814_v40 = vmax.f32 %v778_v36, 0.0  ;;  %v1943_v41 = vadd.f32 %v1942_v38, %v1941_v35  ;;  %v2175_v35 = vld [vmem:[%s2640_s6 + $0x28] sm:$0xff]   ;;  %v910_v36 = vld [vmem:[#allocation9 + $0x18] sm:$0xff]  ;;  %v916_v38 = vunpack.c.h.s8.bf16 %v909_v37 }
 0x20a   :  { %v1944_v43 = vpop.f32.mrf.mxu1 }
 0x20b   :  { %v1855_v44 = vpack.c.bf16 %v814_v40, %v813_v39  ;;  %v783_v48 = vadd.f32 %v1943_v41, %v2520_v42  ;;  %v917_v39 = vunpack.c.l.s8.bf16 %v910_v36  ;;  %v918_v40 = vunpack.c.h.s8.bf16 %v910_v36  ;;  %v2176_v41 = vld [vmem:[%s2640_s6 + $0x60] sm:$0xff]  }
 0x20c   :  { %v1945_v45 = vpop.f32.mrf.mxu1  ;;  %v2542_v46 = vld [vmem:[#allocation3 + $0x18] sm:$0xf]  ;;  %v926_v47 = vld [vmem:[#allocation3 + $0x1c] sm:$0xf] }
 0x20d   :  { %1875 = vst [vmem:[#allocation3 + $0x20] sm:$0xff] %v1855_v44   ;;  %v1946_v49 = vadd.f32 %v1945_v45, %v1944_v43  ;;  %1198 = vst [vmem:[#allocation2 + $0x30] sm:$0xf] %v2542_v46  ;;  %v815_v53 = vmax.f32 %v783_v48, 0.0  ;;  %v1730_v25 = vcombine.low %v2542_v46, %v926_v47  ;;  %v2177_v43 = vld [vmem:[%s2640_s6 + $0x20] sm:$0xff]   ;;  %v2178_v44 = vld [vmem:[%s2640_s6 + $0x58] sm:$0xff]  }
 0x20e   :  { %1199 = vst [vmem:[#allocation2 + $0x38] sm:$0xf] %v926_v47  ;;  %v1947_v50 = vpop.f32.mrf.mxu1  ;;  %v2179_v45 = vld [vmem:[%s2640_s6 + $0x18] sm:$0xff]   ;;  %v2180_v46 = vld [vmem:[%s2640_s6 + $0x50] sm:$0xff]   ;;  %v2182_v48 = vld [vmem:[%s2640_s6 + $0x48] sm:$0xff]  }
 0x20f   :  { %v786_v51 = vadd.f32 %v1946_v49, %v2520_v42  ;;  %v2181_v47 = vld [vmem:[%s2640_s6 + $0x10] sm:$0xff]   ;;  %v2183_v49 = vld [vmem:[%s2640_s6 + $0x8] sm:$0xff]  }
 0x210   :  { %v1948_v52 = vpop.f32.mrf.mxu1 }
 0x211   :  { %v816_v54 = vmax.f32 %v786_v51, 0.0  ;;  %v1949_v55 = vadd.f32 %v1948_v52, %v1947_v50  ;;  %v2184_v50 = vld [vmem:[%s2640_s6 + $0x40] sm:$0xff]   ;;  %v1099_v52 = vpop.permute.xlu0 %1098 }
 0x212   :  { %v1950_v56 = vpop.f32.mrf.mxu1  ;;  %v2185_v51 = vld [vmem:[%s2640_s6] sm:$0xff]  }
 0x213   :  { %v1860_v57 = vpack.c.bf16 %v816_v54, %v815_v53  ;;  %v791_v61 = vadd.f32 %v1949_v55, %v2520_v42  ;;  %v1104_v53 = vpop.permute.xlu1 %1103 }
 0x214   :  { %v1951_v58 = vpop.f32.mrf.mxu1  ;;  %v927_v59 = vld [vmem:[#allocation3 + $0x20] sm:$0xf]  ;;  %v928_v60 = vld [vmem:[#allocation3 + $0x24] sm:$0xf] }
 0x215   :  { %1876 = vst [vmem:[#allocation3 + $0x28] sm:$0xff] %v1860_v57   ;;  %v1952_v62 = vadd.f32 %v1951_v58, %v1950_v56  ;;  %1200 = vst [vmem:[#allocation2 + $0x40] sm:$0xf] %v927_v59  ;;  %v817_v2 = vmax.f32 %v791_v61, 0.0  ;;  %v1109_v54 = vpop.permute.xlu0 %1108 }
 0x216   :  { %1201 = vst [vmem:[#allocation2 + $0x48] sm:$0xf] %v928_v60  ;;  %v1953_v63 = vpop.f32.mrf.mxu1 }
 0x217   :  { %v794_v0 = vadd.f32 %v1952_v62, %v2520_v42  ;;  %v1114_v55 = vpop.permute.xlu1 %1113 }
 0x218   :  { %v1954_v1 = vpop.f32.mrf.mxu1 }
 0x219   :  { %v818_v3 = vmax.f32 %v794_v0, 0.0  ;;  %v1955_v4 = vadd.f32 %v1954_v1, %v1953_v63  ;;  %v1119_v56 = vpop.permute.xlu0 %1118 }
 0x21a   :  { %v1956_v5 = vpop.f32.mrf.mxu1 }
 0x21b   :  { %v1865_v6 = vpack.c.bf16 %v818_v3, %v817_v2  ;;  %v799_v11 = vadd.f32 %v1955_v4, %v2520_v42  ;;  %v1124_v57 = vpop.permute.xlu1 %1123 }
 0x21c   :  { %v1957_v8 = vpop.f32.mrf.mxu1  ;;  %v929_v9 = vld [vmem:[#allocation3 + $0x28] sm:$0xf]  ;;  %v930_v10 = vld [vmem:[#allocation3 + $0x2c] sm:$0xf] }
 0x21d   :  { %1877 = vst [vmem:[#allocation3 + $0x30] sm:$0xff] %v1865_v6   ;;  %v1958_v12 = vadd.f32 %v1957_v8, %v1956_v5  ;;  %1202 = vst [vmem:[#allocation2 + $0x50] sm:$0xf] %v929_v9  ;;  %v819_v14 = vmax.f32 %v799_v11, 0.0  ;;  %v1732_v24 = vcombine.low %v929_v9, %v930_v10  ;;  %v1129_v58 = vpop.permute.xlu0 %1128 }
 0x21e   :  { %1203 = vst [vmem:[#allocation2 + $0x58] sm:$0xf] %v930_v10 }
 0x21f   :  { %v802_v13 = vadd.f32 %v1958_v12, %v2520_v42  ;;  %v1731_v42 = vcombine.low %v927_v59, %v928_v60  ;;  %v1134_v0 = vpop.permute.xlu1 %1133 }
 0x221   :  { %v820_v15 = vmax.f32 %v802_v13, 0.0  ;;  %v1139_v4 = vpop.permute.xlu0 %1138 }
 0x223   :  { %v1870_v16 = vpack.c.bf16 %v820_v15, %v819_v14  ;;  %v1144_v12 = vpop.permute.xlu1 %1143 }
 0x224   :  { %v931_v17 = vld [vmem:[#allocation3 + $0x30] sm:$0xf]  ;;  %v932_v18 = vld [vmem:[#allocation3 + $0x34] sm:$0xf] }
 0x225   :  { %1878 = vst [vmem:[#allocation3 + $0x38] sm:$0xff] %v1870_v16   ;;  %1204 = vst [vmem:[#allocation2 + $0x60] sm:$0xf] %v931_v17  ;;  %v1733_v23 = vcombine.low %v931_v17, %v932_v18  ;;  %v1149_v16 = vpop.permute.xlu0 %1148 }
 0x226   :  { %1205 = vst [vmem:[#allocation2 + $0x68] sm:$0xf] %v932_v18 }
 0x229   :  { %v1159_v27 = vpop.permute.xlu0 %1158 }
 0x22c   :  { %v933_v19 = vld [vmem:[#allocation3 + $0x38] sm:$0xf]  ;;  %v934_v20 = vld [vmem:[#allocation3 + $0x3c] sm:$0xf] }
 0x22d   :  { %v1734_v22 = vcombine.low %v933_v19, %v934_v20  ;;  %1206 = vst [vmem:[#allocation2 + $0x70] sm:$0xf] %v933_v19  ;;  %1207 = vst [vmem:[#allocation2 + $0x78] sm:$0xf] %v934_v20 }
 0x22f   :  { %2071 = vmatprep.subr.bf16.mxu0 %v1734_v22 }
 0x230   :  { %2072 = vmatpush3.bf16.msra.mxu0 %v1734_v22 }
 0x231   :  { %2073 = vmatprep.subr.bf16.mxu0 %v1733_v23 }
 0x234   :  { %2074 = vmatpush3.bf16.msra.mxu0 %v1733_v23 }
 0x235   :  { %2075 = vmatprep.subr.bf16.mxu0 %v1732_v24 }
 0x238   :  { %2076 = vmatpush3.bf16.msra.mxu0 %v1732_v24  ;;  %v1154_v24 = vpop.permute.xlu1 %1153 }
 0x239   :  { %2077 = vmatprep.subr.bf16.mxu0 %v1731_v42 }
 0x23c   :  { %2078 = vmatpush3.bf16.msra.mxu0 %v1731_v42 }
 0x23d   :  { %2079 = vmatprep.subr.bf16.mxu0 %v1730_v25 }
 0x240   :  { %2080 = vmatpush3.bf16.msra.mxu0 %v1730_v25 }
 0x241   :  { %2081 = vmatprep.subr.bf16.mxu0 %v1729_v26 }
 0x244   :  { %2082 = vmatpush3.bf16.msra.mxu0 %v1729_v26 }
 0x245   :  { %2083 = vmatprep.subr.bf16.mxu0 %v2531_v21 }
 0x248   :  { %2084 = vmatpush3.bf16.msra.mxu0 %v2531_v21  ;;  %v2172_v21 = vld [vmem:[%s2640_s6 + $0x70] sm:$0xff]  }
 0x249   :  { %2085 = vmatprep.subr.bf16.mxu0 %v2527_v7 }
 0x24c   :  { %2086 = vmatpush3.bf16.msra.mxu0 %v2527_v7  ;;  %v2174_v7 = vld [vmem:[%s2640_s6 + $0x68] sm:$0xff]  }
 0x24d   :  { %1975 = vmatprep.subr.bf16.mxu0 %v2170_v28 }
 0x24f   :  { %2088 = vmatmul.mubr.bf16.vlgmr.msra.gmra.mxu0 %v912_v29  ;;  %v2186_v29 = vld [vmem:[#allocation2] ss:$8 sps:$4 sm:$0xff]  }
 0x250   :  { %2091 = vmatprep.mubr.bf16.mxu0 %v913_v30  ;;  %1976 = vmatpush3.bf16.msra.mxu0 %v2171_v31 }
 0x251   :  { %1977 = vmatprep.subr.bf16.mxu0 %v2172_v21 }
 0x254   :  { %1978 = vmatpush3.bf16.msra.mxu0 %v2173_v32 }
 0x255   :  { %1979 = vmatprep.subr.bf16.mxu0 %v2174_v7 }
 0x257   :  { %2092 = vmatmul.mubr.bf16.gmra.mxu0 %v914_v33 }
 0x258   :  { %2095 = vmatprep.mubr.bf16.mxu0 %v915_v34  ;;  %1980 = vmatpush3.bf16.msra.mxu0 %v2175_v35  ;;  %v1164_v34 = vpop.permute.xlu1 %1163 }
 0x259   :  { %1981 = vmatprep.subr.bf16.mxu0 %v2176_v41 }
 0x25c   :  { %1982 = vmatpush3.bf16.msra.mxu0 %v2177_v43 }
 0x25d   :  { %1983 = vmatprep.subr.bf16.mxu0 %v2178_v44 }
 0x25f   :  { %2096 = vmatmul.mubr.bf16.gmra.mxu0 %v916_v38 }
 0x260   :  { %2099 = vmatprep.mubr.bf16.mxu0 %v917_v39  ;;  %1984 = vmatpush3.bf16.msra.mxu0 %v2179_v45  ;;  %v1169_v39 = vpop.permute.xlu0 %1168 }
 0x261   :  { %1985 = vmatprep.subr.bf16.mxu0 %v2180_v46 }
 0x264   :  { %1986 = vmatpush3.bf16.msra.mxu0 %v2181_v47  ;;  %v2191_v47 = vld [vmem:[#allocation2 + $0x10] ss:$8 sps:$4 sm:$0xff]  }
 0x265   :  { %1987 = vmatprep.subr.bf16.mxu0 %v2182_v48  ;;  %v1174_v48 = vpop.permute.xlu1 %1173 }
 0x267   :  { %2100 = vmatmul.mubr.bf16.gmra.mxu0 %v918_v40 }
 0x268   :  { %1988 = vmatpush3.bf16.msra.mxu0 %v2183_v49 }
 0x269   :  { %1989 = vmatprep.subr.bf16.mxu0 %v2184_v50 }
 0x26c   :  { %1990 = vmatpush3.bf16.msra.mxu0 %v2185_v51 }
 0x30f   :  { %v2089_v59 = vpop.f32.mrf.mxu0 }
 0x310   :  { %v1178_v60 = vmul.f32 %v2089_v59, %v1109_v54  ;;  %v2197_v59 = vld [vmem:[#allocation2 + $0x30] ss:$8 sps:$4 sm:$0xff]  }
 0x311   :  { %v1017_v61 = vpop.f32.mrf.mxu0 }
 0x312   :  { %v1818_v62 = vpack.c.bf16 %v1178_v60, %v1178_v60  ;;  %v1176_v63 = vmul.f32 %v1099_v52, %v1017_v61  ;;  %v2200_v61 = vld [vmem:[#allocation2 + $0x40] ss:$8 sps:$4 sm:$0xff]  }
 0x313   :  { %v2090_v1 = vpop.f32.mrf.mxu0 }
 0x314   :  { %1274 = vst [vmem:[#allocation2 + $0x14] sm:$0xf] %v1818_v62  ;;  %v1816_v2 = vpack.c.bf16 %v1176_v63, %v1176_v63  ;;  %v1179_v3 = vmul.f32 %v2090_v1, %v1114_v55  ;;  %v2203_v63 = vld [vmem:[#allocation2 + $0x50] ss:$8 sps:$4 sm:$0xff]   ;;  %v2206_v1 = vld [vmem:[#allocation2 + $0x60] ss:$8 sps:$4 sm:$0xff]  }
 0x315   :  { %v1020_v5 = vpop.f32.mrf.mxu0 }
 0x316   :  { %1272 = vst [vmem:[#allocation2 + $0x4] sm:$0xf] %v1816_v2  ;;  %v1819_v6 = vpack.c.bf16 %v1179_v3, %v1179_v3  ;;  %v1177_v8 = vmul.f32 %v1104_v53, %v1020_v5  ;;  %v2209_v3 = vld [vmem:[#allocation2 + $0x70] ss:$8 sps:$4 sm:$0xff]   ;;  %v2610_v5 = vld [vmem:[%s2641_s7] ss:$0 sm:$0xff] }
 0x317   :  { %v2093_v9 = vpop.f32.mrf.mxu0  ;;  %s2304_s7 = smov [#allocation10]  }
 0x318   :  { %1275 = vst [vmem:[#allocation2 + $0x1c] sm:$0xf] %v1819_v6  ;;  %v1817_v10 = vpack.c.bf16 %v1177_v8, %v1177_v8  ;;  %v1182_v11 = vmul.f32 %v2093_v9, %v1129_v58  ;;  %s1637_s17 = sshll.u32 %s2304_s7, 4  ;;  %s1638_s17 = int_to_ptr.vmem [resolvable:$true] %s1637_s17 }
 0x319   :  { %v1033_v13 = vpop.f32.mrf.mxu0  ;;  %s2270_s18 = scalar_lea.vmem %s1638_s17, 2048  ;;  %p2275_p2 = scmp.lt.s32.totalorder %s1638_s17, %s1638_s17 }
 0x31a   :  { %1273 = vst [vmem:[#allocation2 + $0xc] sm:$0xf] %v1817_v10  ;;  %v1822_v14 = vpack.c.bf16 %v1182_v11, %v1182_v11  ;;  %v1180_v15 = vmul.f32 %v1119_v56, %v1033_v13  ;;  %p2271_p1 = scmp.ne.s32.totalorder %s1638_s17, %s2270_s18  ;;  %p2276_p3 = scmp.lt.s32.totalorder %s2270_s18, %s2270_s18 }
 0x31b   :  { %v2094_v17 = vpop.f32.mrf.mxu0 }
 0x31c   :  { %1278 = vst [vmem:[#allocation2 + $0x34] sm:$0xf] %v1822_v14  ;;  %v1820_v18 = vpack.c.bf16 %v1180_v15, %v1180_v15  ;;  %v1183_v19 = vmul.f32 %v2094_v17, %v1134_v0  ;;  %p2277_p4 = por %p2276_p3, %p2275_p2 }
 0x31d   :  { %v1036_v20 = vpop.f32.mrf.mxu0 }
 0x31e   :  { %1276 = vst [vmem:[#allocation2 + $0x24] sm:$0xf] %v1820_v18  ;;  %v1823_v22 = vpack.c.bf16 %v1183_v19, %v1183_v19  ;;  %v1181_v23 = vmul.f32 %v1124_v57, %v1036_v20  ;;  %v2194_v57 = vld [vmem:[#allocation2 + $0x20] ss:$8 sps:$4 sm:$0xff]   ;;  %p2278_p5 = pnand %p2277_p4, %p2271_p1 }
 0x31f   :  { %v2097_v42 = vpop.f32.mrf.mxu0  ;;  %v2189_v37 = vld [vmem:[#allocation2 + $0x14] ss:$8 sps:$4 sm:$0xff]  }
 0x320   :  { %1279 = vst [vmem:[#allocation2 + $0x3c] sm:$0xf] %v1823_v22  ;;  %v1821_v25 = vpack.c.bf16 %v1181_v23, %v1181_v23  ;;  %v1186_v26 = vmul.f32 %v2097_v42, %v1149_v16 }
 0x321   :  { %v1049_v28 = vpop.f32.mrf.mxu0  ;;  %v2188_v30 = vld [vmem:[#allocation2 + $0x4] ss:$8 sps:$4 sm:$0xff]  }
 0x322   :  { %1277 = vst [vmem:[#allocation2 + $0x2c] sm:$0xf] %v1821_v25  ;;  %v1826_v31 = vpack.c.bf16 %v1186_v26, %v1186_v26  ;;  %v1184_v21 = vmul.f32 %v1139_v4, %v1049_v28  ;;  %1551 = vmatprep.mubr.bf16.mxu0 %v2188_v30 }
 0x323   :  { %v2098_v32 = vpop.f32.mrf.mxu0  ;;  %1552 = vmatmul.mubr.bf16.vlgmr.msra.gmra.mxu0 %v2186_v29 }
 0x324   :  { %1282 = vst [vmem:[#allocation2 + $0x54] sm:$0xf] %v1826_v31  ;;  %v1824_v7 = vpack.c.bf16 %v1184_v21, %v1184_v21  ;;  %v1187_v33 = vmul.f32 %v2098_v32, %v1154_v24  ;;  %1559 = vmatprep.mubr.bf16.mxu0 %v2189_v37 }
 0x325   :  { %v1052_v35 = vpop.f32.mrf.mxu0 }
 0x326   :  { %1280 = vst [vmem:[#allocation2 + $0x44] sm:$0xf] %v1824_v7  ;;  %v1827_v36 = vpack.c.bf16 %v1187_v33, %v1187_v33  ;;  %v1185_v38 = vmul.f32 %v1144_v12, %v1052_v35 }
 0x327   :  { %v2101_v40 = vpop.f32.mrf.mxu0  ;;  %v2195_v58 = vld [vmem:[#allocation2 + $0x34] ss:$8 sps:$4 sm:$0xff]  }
 0x328   :  { %1283 = vst [vmem:[#allocation2 + $0x5c] sm:$0xf] %v1827_v36  ;;  %v1825_v41 = vpack.c.bf16 %v1185_v38, %v1185_v38  ;;  %v1190_v43 = vmul.f32 %v2101_v40, %v1169_v39 }
 0x329   :  { %v1065_v44 = vpop.f32.mrf.mxu0  ;;  %v2192_v50 = vld [vmem:[#allocation2 + $0x24] ss:$8 sps:$4 sm:$0xff]  }
 0x32a   :  { %1281 = vst [vmem:[#allocation2 + $0x4c] sm:$0xf] %v1825_v41  ;;  %v1830_v45 = vpack.c.bf16 %v1190_v43, %v1190_v43  ;;  %v1188_v46 = vmul.f32 %v1159_v27, %v1065_v44 }
 0x32b   :  { %v2102_v49 = vpop.f32.mrf.mxu0  ;;  %1560 = vmatmul.mubr.bf16.gmra.mxu0 %v2191_v47 }
 0x32c   :  { %1286 = vst [vmem:[#allocation2 + $0x74] sm:$0xf] %v1830_v45  ;;  %v1828_v51 = vpack.c.bf16 %v1188_v46, %v1188_v46  ;;  %v1191_v52 = vmul.f32 %v2102_v49, %v1174_v48  ;;  %1567 = vmatprep.mubr.bf16.mxu0 %v2192_v50 }
 0x32d   :  { %v1068_v53 = vpop.f32.mrf.mxu0 }
 0x32e   :  { %1284 = vst [vmem:[#allocation2 + $0x64] sm:$0xf] %v1828_v51  ;;  %v1831_v54 = vpack.c.bf16 %v1191_v52, %v1191_v52  ;;  %v1189_v55 = vmul.f32 %v1164_v34, %v1068_v53 }
 0x32f   :  { %v2201_v62 = vld [vmem:[#allocation2 + $0x54] ss:$8 sps:$4 sm:$0xff]  }
 0x330   :  { %1287 = vst [vmem:[#allocation2 + $0x7c] sm:$0xf] %v1831_v54  ;;  %v1829_v56 = vpack.c.bf16 %v1189_v55, %v1189_v55 }
 0x331   :  { %v2198_v60 = vld [vmem:[#allocation2 + $0x44] ss:$8 sps:$4 sm:$0xff]  }
 0x332   :  { %1285 = vst [vmem:[#allocation2 + $0x6c] sm:$0xf] %v1829_v56 }
 0x333   :  { %1568 = vmatmul.mubr.bf16.gmra.mxu0 %v2194_v57 }
 0x334   :  { %1575 = vmatprep.mubr.bf16.mxu0 %v2195_v58 }
 0x337   :  { %v2207_v2 = vld [vmem:[#allocation2 + $0x74] ss:$8 sps:$4 sm:$0xff]  }
 0x339   :  { %v2204_v0 = vld [vmem:[#allocation2 + $0x64] ss:$8 sps:$4 sm:$0xff]  }
 0x33b   :  { %1576 = vmatmul.mubr.bf16.gmra.mxu0 %v2197_v59 }
 0x33c   :  { %1583 = vmatprep.mubr.bf16.mxu0 %v2198_v60 }
 0x343   :  { %1584 = vmatmul.mubr.bf16.gmra.mxu0 %v2200_v61 }
 0x344   :  { %1591 = vmatprep.mubr.bf16.mxu0 %v2201_v62 }
 0x34b   :  { %1592 = vmatmul.mubr.bf16.gmra.mxu0 %v2203_v63 }
 0x34c   :  { %1599 = vmatprep.mubr.bf16.mxu0 %v2204_v0 }
 0x353   :  { %1600 = vmatmul.mubr.bf16.gmra.mxu0 %v2206_v1 }
 0x354   :  { %1607 = vmatprep.mubr.bf16.mxu0 %v2207_v2 }
 0x35b   :  { %1608 = vmatmul.mubr.bf16.gmra.mxu0 %v2209_v3 }
 0x3e3   :  { %v1991_v4 = vpop.f32.mrf.mxu0 }
 0x3e5   :  { %v1992_v6 = vpop.f32.mrf.mxu0 }
 0x3e6   :  { %v1993_v8 = vadd.f32 %v1992_v6, %v1991_v4 }
 0x3e7   :  { %v1994_v9 = vpop.f32.mrf.mxu0 }
 0x3e8   :  { %v1554_v10 = vadd.f32 %v1993_v8, %v2610_v5 }
 0x3e9   :  { %v1995_v11 = vpop.f32.mrf.mxu0 }
 0x3ea   :  { %1616 = vst [vmem:[#allocation10] sm:$0xff] %v1554_v10  ;;  %v1996_v12 = vadd.f32 %v1995_v11, %v1994_v9 }
 0x3eb   :  { %v1997_v13 = vpop.f32.mrf.mxu0 }
 0x3ec   :  { %v1557_v14 = vadd.f32 %v1996_v12, %v2610_v5 }
 0x3ed   :  { %v1998_v15 = vpop.f32.mrf.mxu0 }
 0x3ee   :  { %1617 = vst [vmem:[#allocation10 + $0x8] sm:$0xff] %v1557_v14  ;;  %v1999_v16 = vadd.f32 %v1998_v15, %v1997_v13 }
 0x3ef   :  { %v2000_v17 = vpop.f32.mrf.mxu0 }
 0x3f0   :  { %v1562_v18 = vadd.f32 %v1999_v16, %v2610_v5 }
 0x3f1   :  { %v2001_v19 = vpop.f32.mrf.mxu0 }
 0x3f2   :  { %1618 = vst [vmem:[#allocation10 + $0x10] sm:$0xff] %v1562_v18  ;;  %v2002_v20 = vadd.f32 %v2001_v19, %v2000_v17 }
 0x3f3   :  { %v2003_v22 = vpop.f32.mrf.mxu0 }
 0x3f4   :  { %v1565_v23 = vadd.f32 %v2002_v20, %v2610_v5 }
 0x3f5   :  { %v2004_v24 = vpop.f32.mrf.mxu0 }
 0x3f6   :  { %1619 = vst [vmem:[#allocation10 + $0x18] sm:$0xff] %v1565_v23  ;;  %v2005_v42 = vadd.f32 %v2004_v24, %v2003_v22 }
 0x3f7   :  { %v2006_v25 = vpop.f32.mrf.mxu0 }
 0x3f8   :  { %v1570_v26 = vadd.f32 %v2005_v42, %v2610_v5 }
 0x3f9   :  { %v2007_v27 = vpop.f32.mrf.mxu0 }
 0x3fa   :  { %1620 = vst [vmem:[#allocation10 + $0x20] sm:$0xff] %v1570_v26  ;;  %v2008_v28 = vadd.f32 %v2007_v27, %v2006_v25 }
 0x3fb   :  { %v2009_v29 = vpop.f32.mrf.mxu0 }
 0x3fc   :  { %v1573_v30 = vadd.f32 %v2008_v28, %v2610_v5 }
 0x3fd   :  { %v2010_v31 = vpop.f32.mrf.mxu0 }
 0x3fe   :  { %1621 = vst [vmem:[#allocation10 + $0x28] sm:$0xff] %v1573_v30  ;;  %v2011_v21 = vadd.f32 %v2010_v31, %v2009_v29 }
 0x3ff   :  { %v2012_v32 = vpop.f32.mrf.mxu0 }
 0x400   :  { %v1578_v37 = vadd.f32 %v2011_v21, %v2610_v5 }
 0x401   :  { %v2013_v7 = vpop.f32.mrf.mxu0 }
 0x402   :  { %1622 = vst [vmem:[#allocation10 + $0x30] sm:$0xff] %v1578_v37  ;;  %v2014_v33 = vadd.f32 %v2013_v7, %v2012_v32 }
 0x403   :  { %v2015_v34 = vpop.f32.mrf.mxu0 }
 0x404   :  { %v1581_v35 = vadd.f32 %v2014_v33, %v2610_v5 }
 0x405   :  { %v2016_v36 = vpop.f32.mrf.mxu0 }
 0x406   :  { %1623 = vst [vmem:[#allocation10 + $0x38] sm:$0xff] %v1581_v35  ;;  %v2017_v38 = vadd.f32 %v2016_v36, %v2015_v34 }
 0x407   :  { %v2018_v39 = vpop.f32.mrf.mxu0 }
 0x408   :  { %v1586_v40 = vadd.f32 %v2017_v38, %v2610_v5 }
 0x409   :  { %v2019_v41 = vpop.f32.mrf.mxu0 }
 0x40a   :  { %1624 = vst [vmem:[#allocation10 + $0x40] sm:$0xff] %v1586_v40  ;;  %v2020_v43 = vadd.f32 %v2019_v41, %v2018_v39 }
 0x40b   :  { %v2021_v44 = vpop.f32.mrf.mxu0 }
 0x40c   :  { %v1589_v45 = vadd.f32 %v2020_v43, %v2610_v5 }
 0x40d   :  { %v2022_v46 = vpop.f32.mrf.mxu0 }
 0x40e   :  { %1625 = vst [vmem:[#allocation10 + $0x48] sm:$0xff] %v1589_v45  ;;  %v2023_v47 = vadd.f32 %v2022_v46, %v2021_v44 }
 0x40f   :  { %v2024_v48 = vpop.f32.mrf.mxu0 }
 0x410   :  { %v1594_v49 = vadd.f32 %v2023_v47, %v2610_v5 }
 0x411   :  { %v2025_v50 = vpop.f32.mrf.mxu0 }
 0x412   :  { %1626 = vst [vmem:[#allocation10 + $0x50] sm:$0xff] %v1594_v49  ;;  %v2026_v51 = vadd.f32 %v2025_v50, %v2024_v48 }
 0x413   :  { %v2027_v52 = vpop.f32.mrf.mxu0 }
 0x414   :  { %v1597_v53 = vadd.f32 %v2026_v51, %v2610_v5 }
 0x415   :  { %v2028_v54 = vpop.f32.mrf.mxu0 }
 0x416   :  { %1627 = vst [vmem:[#allocation10 + $0x58] sm:$0xff] %v1597_v53  ;;  %v2029_v55 = vadd.f32 %v2028_v54, %v2027_v52 }
 0x417   :  { %v2030_v56 = vpop.f32.mrf.mxu0 }
 0x418   :  { %v1602_v57 = vadd.f32 %v2029_v55, %v2610_v5 }
 0x419   :  { %v2031_v58 = vpop.f32.mrf.mxu0 }
 0x41a   :  { %1628 = vst [vmem:[#allocation10 + $0x60] sm:$0xff] %v1602_v57  ;;  %v2032_v59 = vadd.f32 %v2031_v58, %v2030_v56 }
 0x41b   :  { %v2033_v60 = vpop.f32.mrf.mxu0 }
 0x41c   :  { %v1605_v61 = vadd.f32 %v2032_v59, %v2610_v5 }
 0x41d   :  { %v2034_v62 = vpop.f32.mrf.mxu0 }
 0x41e   :  { %1629 = vst [vmem:[#allocation10 + $0x68] sm:$0xff] %v1605_v61  ;;  %v2035_v63 = vadd.f32 %v2034_v62, %v2033_v60 }
 0x41f   :  { %v2036_v0 = vpop.f32.mrf.mxu0 }
 0x420   :  { %v1610_v1 = vadd.f32 %v2035_v63, %v2610_v5 }
 0x421   :  { %v2037_v2 = vpop.f32.mrf.mxu0 }
 0x422   :  { %1630 = vst [vmem:[#allocation10 + $0x70] sm:$0xff] %v1610_v1  ;;  %v2038_v3 = vadd.f32 %v2037_v2, %v2036_v0 }
 0x424   :  { %v1613_v4 = vadd.f32 %v2038_v3, %v2610_v5 }
 0x426   :  { %1631 = vst [vmem:[#allocation10 + $0x78] sm:$0xff] %v1613_v4 }
 0x427   :  { %2281 = shalt.err (!%p2278_p5)
}
 0x428   :  { %1643 = dma.vmem_to_hbm [thread:$0]  %s1638_s17, 2048, %s2643_s9, [#allocation6], %s2297_s12, %s2297_s12, %s2298_s13  }
 0x429   :  { %2294 = dma.done.wait [#allocation6], 2048  }
 0x42a   :  { %2295 = vsyncadd [#allocation6], 4294965248 }
 0x42b   :  { %1647 = vsyncpa [#allocation5], 1 }
 0x42c   :  { %1648 = vsyncpa [#allocation8], 1 }
 0x42d   :  { %1649 = vsyncpa [#allocation6], 1 }

</bundles_post_ra>
